<compile_context>
chip_gen: v7x
topology: tpu7x:2x2x1
jax: 0.10.0
libtpu: 0.0.40
codegen_flags: <defaults>
</compile_context>

<pallas_src>
import functools

import jax
import jax.numpy as jnp
from jax import lax
from jax.experimental import pallas as pl
from jax.experimental.pallas import tpu as pltpu
import numpy as np


# ---------------------------------------------------------------------------
# Pallas kernel: one grid step == one chunk of TT time steps of the 2-layer
# LSTM. Emits the top-layer hidden state h2 (time-major) for the chunk.
# ---------------------------------------------------------------------------
def lstm_chunk_kernel(xg_ref,      # (TT, bt, 4H) bf16: time-major x@W_ih1 + b1
                      whh1_ref,    # (H, 4H)      bf16: layer-1 recurrent weights
                      w2_ref,      # (2H, 4H)     bf16: [W_ih2 ; W_hh2]
                      b2_ref,      # (1, 4H)      f32:  layer-2 bias (b_ih + b_hh)
                      out_ref,     # (TT, bt, H)  f32:  time-major h2
                      hh, c1, c2,  # scratch: (bt,2H) bf16, (bt,H) f32, (bt,H) f32
                      *, unroll):
    t = pl.program_id(1)

    # Zero initial state (PyTorch default) at the start of each batch shard.
    @pl.when(t == 0)
    def _():
        hh[...] = jnp.zeros_like(hh)
        c1[...] = jnp.zeros_like(c1)
        c2[...] = jnp.zeros_like(c2)

    H = c1.shape[-1]
    bt = c1.shape[0]
    TT = xg_ref.shape[0]

    # Loop-invariant loads / broadcasts hoisted out of the time loop
    # (JAX does not CSE broadcast_in_dim).
    whh1 = whh1_ref[...]
    w2 = w2_ref[...]
    b2 = jnp.broadcast_to(b2_ref[...], (bt, 4 * H))

    def gates_to_hc(gates, c):
        # Gate columns pre-permuted to (i, f, o, g): one contiguous sigmoid
        # region, one tanh region. All activation math in f32.
        sig = jax.nn.sigmoid(gates[:, : 3 * H])
        i = sig[:, 0 * H:1 * H]
        f = sig[:, 1 * H:2 * H]
        o = sig[:, 2 * H:3 * H]
        g = jnp.tanh(gates[:, 3 * H:])
        c_new = f * c + i * g
        h_new = o * jnp.tanh(c_new)
        return h_new, c_new

    def step(j, _):
        # ---- layer 1: input projection was precomputed outside the kernel --
        gates1 = xg_ref[j].astype(jnp.float32) + jnp.dot(
            hh[:, :H], whh1, preferred_element_type=jnp.float32)
        h1_new, c1_new = gates_to_hc(gates1, c1[...])
        c1[...] = c1_new
        hh[:, :H] = h1_new.astype(hh.dtype)          # hh = [h1_new | h2_old]

        # ---- layer 2: single fused matmul [h1_new, h2_old] @ [Wih2; Whh2] --
        gates2 = jnp.dot(hh[...], w2, preferred_element_type=jnp.float32) + b2
        h2_new, c2_new = gates_to_hc(gates2, c2[...])
        c2[...] = c2_new
        hh[:, H:] = h2_new.astype(hh.dtype)

        out_ref[j] = h2_new                          # FC head applied outside
        return None

    # Recurrence forces seriality; fori_loop bounds live ranges (vs. a big
    # static unroll) while a modest unroll keeps LLO scheduling visibility.
    lax.fori_loop(0, TT, step, None, unroll=unroll)


# ---------------------------------------------------------------------------
# Wrapper
# ---------------------------------------------------------------------------
def _permute_gate_cols(w):
    # PyTorch gate order (i, f, g, o) -> (i, f, o, g): sigmoid gates contiguous.
    i, f, g, o = jnp.split(w, 4, axis=-1)
    return jnp.concatenate([i, f, o, g], axis=-1)


def base_lstm_forward(x, params, *, time_block=64, batch_block=None,
                      mxu_dtype=jnp.bfloat16, vmem_budget_bytes=48 << 20):
    """x: (B, T, input_size) float32 -> (B, T, output_size) float32."""
    B, T, _ = x.shape
    H = params["whh1"].shape[0]
    O = params["wfc"].shape[1]
    G = 4 * H

    bt = B if batch_block is None else batch_block
    assert B % bt == 0, "batch_block must divide batch size"
    nb = B // bt

    # --- adaptive time chunk TT (multiple of 8) from a VMEM budget -----------
    # Double-buffered pipeline bytes per time step: xg (bf16) + out (f32).
    per_tt = 2 * bt * G * 2 + 2 * bt * H * 4
    # Single-buffered weights + bias + state scratch.
    fixed = 3 * H * G * 2 + G * 4 + bt * 2 * H * 2 + 2 * bt * H * 4
    tt_fit = (vmem_budget_bytes - fixed) // per_tt
    TT = max(8, min(time_block, int(tt_fit), ((T + 7) // 8) * 8))
    TT = (TT // 8) * 8
    T_pad = ((T + TT - 1) // TT) * TT
    nt = T_pad // TT

    # --- gate-column permutation + weight prep (offline, zero runtime cost) --
    wih1 = _permute_gate_cols(params["wih1"])
    b1 = _permute_gate_cols(params["b1"])
    whh1 = _permute_gate_cols(params["whh1"]).astype(mxu_dtype)
    w2 = _permute_gate_cols(
        jnp.concatenate([params["wih2"], params["whh2"]], axis=0)).astype(mxu_dtype)
    b2 = _permute_gate_cols(params["b2"]).astype(jnp.float32)

    # --- hoisted layer-1 input projection: one big MXU matmul, TIME-MAJOR ----
    xg = jnp.einsum("bti,ig->tbg", x, wih1,
                    preferred_element_type=jnp.float32) + b1
    xg = xg.astype(mxu_dtype)                       # halve the dominant HBM stream
    if T_pad != T:
        xg = jnp.pad(xg, ((0, T_pad - T), (0, 0), (0, 0)))

    # --- explicit VMEM limit derived from the actual block sizes -------------
    vmem_limit = int(1.15 * (TT * per_tt + fixed)) + (4 << 20)
    vmem_limit = min(max(vmem_limit, 16 << 20), 100 << 20)

    kernel = functools.partial(lstm_chunk_kernel, unroll=min(8, TT))

    h2_tm = pl.pallas_call(
        kernel,
        out_shape=jax.ShapeDtypeStruct((T_pad, B, H), jnp.float32),
        grid_spec=pltpu.PrefetchScalarGridSpec(
            num_scalar_prefetch=0,
            grid=(nb, nt),
            in_specs=[
                # time-major xg chunk
                pl.BlockSpec((TT, bt, G), lambda b, t: (t, b, 0)),
                # resident weights: constant index_map -> single-buffer them
                pl.BlockSpec((H, G), lambda b, t: (0, 0),
                             pipeline_mode=pl.Buffered(1)),
                pl.BlockSpec((2 * H, G), lambda b, t: (0, 0),
                             pipeline_mode=pl.Buffered(1)),
                pl.BlockSpec((1, G), lambda b, t: (0, 0),
                             pipeline_mode=pl.Buffered(1)),
            ],
            out_specs=pl.BlockSpec((TT, bt, H), lambda b, t: (t, b, 0)),
            scratch_shapes=[
                pltpu.VMEM((bt, 2 * H), mxu_dtype),     # hh = [h1 | h2] (bf16)
                pltpu.VMEM((bt, H), jnp.float32),       # c1
                pltpu.VMEM((bt, H), jnp.float32),       # c2
            ],
        ),
        compiler_params=pltpu.CompilerParams(
            # batch shards independent (megacore on v7x); time is recurrent.
            dimension_semantics=("parallel", "arbitrary"),
            vmem_limit_bytes=vmem_limit,
        ),
    )(xg, whh1, w2, b2)

    # --- hoisted FC head: one big lane-dense matmul, single transpose after --
    h2_tm = h2_tm[:T]                                # (T, B, H)
    out = h2_tm.reshape(T * B, H) @ params["wfc"] + params["bfc"]
    return out.reshape(T, B, O).transpose(1, 0, 2)


# ---------------------------------------------------------------------------
# Deterministic parameter init (PyTorch-style uniform(-1/sqrt(H), 1/sqrt(H))).
# Weights stored pre-transposed: (in_features, 4H) / (H, O); b_ih+b_hh folded.
# Gate order here is PyTorch's (i, f, g, o); the wrapper permutes offline.
# ---------------------------------------------------------------------------
def init_params(key, input_size, hidden_size, output_size):
    H = hidden_size
    k = 1.0 / np.sqrt(H)
    keys = jax.random.split(key, 9)
    u = lambda kk, shape: jax.random.uniform(kk, shape, jnp.float32, -k, k)
    return {
        "wih1": u(keys[0], (input_size, 4 * H)),
        "whh1": u(keys[1], (H, 4 * H)),
        "b1":   u(keys[2], (1, 4 * H)) + u(keys[3], (1, 4 * H)),  # b_ih + b_hh
        "wih2": u(keys[4], (H, 4 * H)),
        "whh2": u(keys[5], (H, 4 * H)),
        "b2":   u(keys[6], (1, 4 * H)) + u(keys[7], (1, 4 * H)),
        "wfc":  u(keys[8], (H, output_size)),
        "bfc":  jnp.zeros((1, output_size), jnp.float32),
    }


# ---------------------------------------------------------------------------
# Pure-JAX reference with the SAME numerics (bf16 xg / recurrent matmul
# inputs, f32 accumulation & activations) for a tight correctness check.
# Uses the original PyTorch gate order (the wrapper's permutation is a pure
# relabeling, so results must match).
# ---------------------------------------------------------------------------
def base_lstm_ref(x, params, mxu_dtype=jnp.bfloat16):
    B, T, _ = x.shape
    H = params["whh1"].shape[0]
    whh1 = params["whh1"].astype(mxu_dtype)
    w2 = jnp.concatenate([params["wih2"], params["whh2"]], axis=0).astype(mxu_dtype)

    xg_all = (jnp.einsum("bti,ig->btg", x, params["wih1"],
                         preferred_element_type=jnp.float32)
              + params["b1"]).astype(mxu_dtype)

    def gates_to_hc(gates, c):
        i = jax.nn.sigmoid(gates[:, 0 * H:1 * H])
        f = jax.nn.sigmoid(gates[:, 1 * H:2 * H])
        g = jnp.tanh(gates[:, 2 * H:3 * H])
        o = jax.nn.sigmoid(gates[:, 3 * H:4 * H])
        c_new = f * c + i * g
        return o * jnp.tanh(c_new), c_new

    h1 = h2 = c1 = c2 = jnp.zeros((B, H), jnp.float32)
    outs = []
    for t in range(T):
        gates1 = xg_all[:, t, :].astype(jnp.float32) + jnp.dot(
            h1.astype(mxu_dtype), whh1, preferred_element_type=jnp.float32)
        h1, c1 = gates_to_hc(gates1, c1)
        h12 = jnp.concatenate([h1, h2], axis=-1).astype(mxu_dtype)
        gates2 = jnp.dot(h12, w2, preferred_element_type=jnp.float32) + params["b2"]
        h2, c2 = gates_to_hc(gates2, c2)
        outs.append(h2)
    h2_seq = jnp.stack(outs, axis=1)
    out = h2_seq.reshape(B * T, H) @ params["wfc"] + params["bfc"]
    return out.reshape(B, T, -1)


if __name__ == "__main__":
    B, T = 2, 8
    input_size, hidden_size, output_size = 4, 32, 4

    key = jax.random.PRNGKey(0)
    kx, kp = jax.random.split(key)
    x = jax.random.normal(kx, (B, T, input_size), jnp.float32)
    params = init_params(kp, input_size, hidden_size, output_size)

    out = base_lstm_forward(x, params)
    out = jax.block_until_ready(out)

    assert out.shape == (B, T, output_size), out.shape

    ref = jax.block_until_ready(base_lstm_ref(x, params))
    np.testing.assert_allclose(np.asarray(out), np.asarray(ref),
                               rtol=2e-3, atol=2e-3)

    print("KERNEL_OK")
</pallas_src>

<mosaic_0001>
module attributes {stable_mosaic.version = 11 : i64} {
  func.func @lstm_chunk_kernel(%arg0: i32, %arg1: i32, %arg2: memref<8x2x128xbf16, #tpu.memory_space<vmem>>, %arg3: memref<32x128xbf16, #tpu.memory_space<vmem>>, %arg4: memref<64x128xbf16, #tpu.memory_space<vmem>>, %arg5: memref<1x128xf32, #tpu.memory_space<vmem>>, %arg6: memref<8x2x32xf32, #tpu.memory_space<vmem>>, %arg7: memref<2x64xbf16, #tpu.memory_space<vmem>>, %arg8: memref<2x32xf32, #tpu.memory_space<vmem>>, %arg9: memref<2x32xf32, #tpu.memory_space<vmem>>) attributes {dimension_semantics = [#tpu.dimension_semantics<parallel>, #tpu.dimension_semantics<arbitrary>], iteration_bounds = array<i64: 1, 1>, scalar_prefetch = 0 : i64, scratch_operands = 3 : i64, tpu.core_type = #tpu.core_type<tc>, window_params = [{transform_indices = @transform_0, window_bounds = array<i64: 8, 2, 128>}, {pipeline_mode = #tpu.pipeline_mode<synchronous>, transform_indices = @transform_1, window_bounds = array<i64: 32, 128>}, {pipeline_mode = #tpu.pipeline_mode<synchronous>, transform_indices = @transform_2, window_bounds = array<i64: 64, 128>}, {pipeline_mode = #tpu.pipeline_mode<synchronous>, transform_indices = @transform_3, window_bounds = array<i64: 1, 128>}, {transform_indices = @transform_4, window_bounds = array<i64: 8, 2, 32>}]} {
    %c0_i32 = arith.constant 0 : i32
    %0 = arith.cmpi eq, %arg1, %c0_i32 : i32
    %1 = arith.extui %0 : i1 to i32
    %c0_i32_0 = arith.constant 0 : i32
    %2 = arith.cmpi ne, %1, %c0_i32_0 : i32
    scf.if %2 {
      %cst_197 = arith.constant 0.000000e+00 : bf16
      %440 = vector.broadcast %cst_197 : bf16 to vector<2x64xbf16>
      %c0_198 = arith.constant 0 : index
      %c0_199 = arith.constant 0 : index
      %441 = vector.load %arg7[%c0_198, %c0_199] : memref<2x64xbf16, #tpu.memory_space<vmem>>, vector<2x64xbf16>
      tpu.vector_store %arg7[%c0_198, %c0_199], %440 {strides = array<i32>} : memref<2x64xbf16, #tpu.memory_space<vmem>>, vector<2x64xbf16>,
      %cst_200 = arith.constant 0.000000e+00 : f32
      %442 = vector.broadcast %cst_200 : f32 to vector<2x32xf32>
      %c0_201 = arith.constant 0 : index
      %c0_202 = arith.constant 0 : index
      %443 = vector.load %arg8[%c0_201, %c0_202] : memref<2x32xf32, #tpu.memory_space<vmem>>, vector<2x32xf32>
      tpu.vector_store %arg8[%c0_201, %c0_202], %442 {strides = array<i32>} : memref<2x32xf32, #tpu.memory_space<vmem>>, vector<2x32xf32>,
      %cst_203 = arith.constant 0.000000e+00 : f32
      %444 = vector.broadcast %cst_203 : f32 to vector<2x32xf32>
      %c0_204 = arith.constant 0 : index
      %c0_205 = arith.constant 0 : index
      %445 = vector.load %arg9[%c0_204, %c0_205] : memref<2x32xf32, #tpu.memory_space<vmem>>, vector<2x32xf32>
      tpu.vector_store %arg9[%c0_204, %c0_205], %444 {strides = array<i32>} : memref<2x32xf32, #tpu.memory_space<vmem>>, vector<2x32xf32>,
    } else {
    }
    %c0 = arith.constant 0 : index
    %c0_1 = arith.constant 0 : index
    %3 = vector.load %arg3[%c0, %c0_1] : memref<32x128xbf16, #tpu.memory_space<vmem>>, vector<32x128xbf16>
    %c0_2 = arith.constant 0 : index
    %c0_3 = arith.constant 0 : index
    %4 = vector.load %arg4[%c0_2, %c0_3] : memref<64x128xbf16, #tpu.memory_space<vmem>>, vector<64x128xbf16>
    %c0_4 = arith.constant 0 : index
    %c0_5 = arith.constant 0 : index
    %5 = vector.load %arg5[%c0_4, %c0_5] : memref<1x128xf32, #tpu.memory_space<vmem>>, vector<1x128xf32>
    %6 = vector.shape_cast %5 : vector<1x128xf32> to vector<1x128xf32>
    %7 = vector.broadcast %6 : vector<1x128xf32> to vector<2x128xf32>
    %c0_i32_6 = arith.constant 0 : i32
    %8 = arith.index_cast %c0_i32_6 : i32 to index
    %c0_7 = arith.constant 0 : index
    %c0_8 = arith.constant 0 : index
    %9 = vector.load %arg2[%8, %c0_7, %c0_8] : memref<8x2x128xbf16, #tpu.memory_space<vmem>>, vector<1x2x128xbf16>
    %10 = vector.shape_cast %9 : vector<1x2x128xbf16> to vector<2x128xbf16>
    %11 = arith.extf %10 : vector<2x128xbf16> to vector<2x128xf32>
    %c0_9 = arith.constant 0 : index
    %c0_10 = arith.constant 0 : index
    %12 = vector.load %arg7[%c0_9, %c0_10] : memref<2x64xbf16, #tpu.memory_space<vmem>>, vector<2x32xbf16>
    %cst = arith.constant dense<0.000000e+00> : vector<2x128xf32>
    %13 = tpu.matmul %12, %3, %cst {dimension_numbers = #tpu.dot_dimension_numbers<[1], [0], [0], [1], [0, 0, 1, 1], [], []>} : vector<2x32xbf16>, vector<32x128xbf16>, vector<2x128xf32> -> vector<2x128xf32>
    %14 = arith.addf %11, %13 : vector<2x128xf32>
    %c0_11 = arith.constant 0 : index
    %c0_12 = arith.constant 0 : index
    %15 = vector.load %arg8[%c0_11, %c0_12] : memref<2x32xf32, #tpu.memory_space<vmem>>, vector<2x32xf32>
    %16 = vector.extract_strided_slice %14 {offsets = [0, 0], sizes = [2, 96], strides = [1, 1]} : vector<2x128xf32> to vector<2x96xf32>
    %17 = arith.negf %16 : vector<2x96xf32>
    %18 = math.exp %17 : vector<2x96xf32>
    %cst_13 = arith.constant 1.000000e+00 : f32
    %19 = vector.broadcast %cst_13 : f32 to vector<2x96xf32>
    %20 = arith.addf %19, %18 : vector<2x96xf32>
    %21 = arith.divf %19, %20 : vector<2x96xf32>
    %22 = vector.extract_strided_slice %21 {offsets = [0, 0], sizes = [2, 32], strides = [1, 1]} : vector<2x96xf32> to vector<2x32xf32>
    %23 = vector.extract_strided_slice %21 {offsets = [0, 32], sizes = [2, 32], strides = [1, 1]} : vector<2x96xf32> to vector<2x32xf32>
    %24 = vector.extract_strided_slice %21 {offsets = [0, 64], sizes = [2, 32], strides = [1, 1]} : vector<2x96xf32> to vector<2x32xf32>
    %25 = vector.extract_strided_slice %14 {offsets = [0, 96], sizes = [2, 32], strides = [1, 1]} : vector<2x128xf32> to vector<2x32xf32>
    %26 = math.tanh %25 : vector<2x32xf32>
    %27 = arith.mulf %23, %15 : vector<2x32xf32>
    %28 = arith.mulf %22, %26 : vector<2x32xf32>
    %29 = arith.addf %27, %28 : vector<2x32xf32>
    %30 = math.tanh %29 : vector<2x32xf32>
    %31 = arith.mulf %24, %30 : vector<2x32xf32>
    %c0_14 = arith.constant 0 : index
    %c0_15 = arith.constant 0 : index
    %32 = vector.load %arg8[%c0_14, %c0_15] : memref<2x32xf32, #tpu.memory_space<vmem>>, vector<2x32xf32>
    tpu.vector_store %arg8[%c0_14, %c0_15], %29 {strides = array<i32>} : memref<2x32xf32, #tpu.memory_space<vmem>>, vector<2x32xf32>,
    %33 = arith.truncf %31 : vector<2x32xf32> to vector<2x32xbf16>
    %c0_16 = arith.constant 0 : index
    %c0_17 = arith.constant 0 : index
    %34 = vector.load %arg7[%c0_16, %c0_17] : memref<2x64xbf16, #tpu.memory_space<vmem>>, vector<2x32xbf16>
    tpu.vector_store %arg7[%c0_16, %c0_17], %33 {strides = array<i32>} : memref<2x64xbf16, #tpu.memory_space<vmem>>, vector<2x32xbf16>,
    %c0_18 = arith.constant 0 : index
    %c0_19 = arith.constant 0 : index
    %35 = vector.load %arg7[%c0_18, %c0_19] : memref<2x64xbf16, #tpu.memory_space<vmem>>, vector<2x64xbf16>
    %cst_20 = arith.constant dense<0.000000e+00> : vector<2x128xf32>
    %36 = tpu.matmul %35, %4, %cst_20 {dimension_numbers = #tpu.dot_dimension_numbers<[1], [0], [0], [1], [0, 0, 1, 1], [], []>} : vector<2x64xbf16>, vector<64x128xbf16>, vector<2x128xf32> -> vector<2x128xf32>
    %37 = arith.addf %36, %7 : vector<2x128xf32>
    %c0_21 = arith.constant 0 : index
    %c0_22 = arith.constant 0 : index
    %38 = vector.load %arg9[%c0_21, %c0_22] : memref<2x32xf32, #tpu.memory_space<vmem>>, vector<2x32xf32>
    %39 = vector.extract_strided_slice %37 {offsets = [0, 0], sizes = [2, 96], strides = [1, 1]} : vector<2x128xf32> to vector<2x96xf32>
    %40 = arith.negf %39 : vector<2x96xf32>
    %41 = math.exp %40 : vector<2x96xf32>
    %cst_23 = arith.constant 1.000000e+00 : f32
    %42 = vector.broadcast %cst_23 : f32 to vector<2x96xf32>
    %43 = arith.addf %42, %41 : vector<2x96xf32>
    %44 = arith.divf %42, %43 : vector<2x96xf32>
    %45 = vector.extract_strided_slice %44 {offsets = [0, 0], sizes = [2, 32], strides = [1, 1]} : vector<2x96xf32> to vector<2x32xf32>
    %46 = vector.extract_strided_slice %44 {offsets = [0, 32], sizes = [2, 32], strides = [1, 1]} : vector<2x96xf32> to vector<2x32xf32>
    %47 = vector.extract_strided_slice %44 {offsets = [0, 64], sizes = [2, 32], strides = [1, 1]} : vector<2x96xf32> to vector<2x32xf32>
    %48 = vector.extract_strided_slice %37 {offsets = [0, 96], sizes = [2, 32], strides = [1, 1]} : vector<2x128xf32> to vector<2x32xf32>
    %49 = math.tanh %48 : vector<2x32xf32>
    %50 = arith.mulf %46, %38 : vector<2x32xf32>
    %51 = arith.mulf %45, %49 : vector<2x32xf32>
    %52 = arith.addf %50, %51 : vector<2x32xf32>
    %53 = math.tanh %52 : vector<2x32xf32>
    %54 = arith.mulf %47, %53 : vector<2x32xf32>
    %c0_24 = arith.constant 0 : index
    %c0_25 = arith.constant 0 : index
    %55 = vector.load %arg9[%c0_24, %c0_25] : memref<2x32xf32, #tpu.memory_space<vmem>>, vector<2x32xf32>
    tpu.vector_store %arg9[%c0_24, %c0_25], %52 {strides = array<i32>} : memref<2x32xf32, #tpu.memory_space<vmem>>, vector<2x32xf32>,
    %56 = arith.truncf %54 : vector<2x32xf32> to vector<2x32xbf16>
    %c0_26 = arith.constant 0 : index
    %c32 = arith.constant 32 : index
    %57 = vector.load %arg7[%c0_26, %c32] : memref<2x64xbf16, #tpu.memory_space<vmem>>, vector<2x32xbf16>
    tpu.vector_store %arg7[%c0_26, %c32], %56 {strides = array<i32>} : memref<2x64xbf16, #tpu.memory_space<vmem>>, vector<2x32xbf16>,
    %58 = arith.index_cast %c0_i32_6 : i32 to index
    %c0_27 = arith.constant 0 : index
    %c0_28 = arith.constant 0 : index
    %59 = vector.load %arg6[%58, %c0_27, %c0_28] : memref<8x2x32xf32, #tpu.memory_space<vmem>>, vector<1x2x32xf32>
    %60 = vector.shape_cast %59 : vector<1x2x32xf32> to vector<2x32xf32>
    %61 = vector.shape_cast %54 : vector<2x32xf32> to vector<1x2x32xf32>
    tpu.vector_store %arg6[%58, %c0_27, %c0_28], %61 {strides = array<i32>} : memref<8x2x32xf32, #tpu.memory_space<vmem>>, vector<1x2x32xf32>,
    %c1_i32 = arith.constant 1 : i32
    %62 = arith.index_cast %c1_i32 : i32 to index
    %c0_29 = arith.constant 0 : index
    %c0_30 = arith.constant 0 : index
    %63 = vector.load %arg2[%62, %c0_29, %c0_30] : memref<8x2x128xbf16, #tpu.memory_space<vmem>>, vector<1x2x128xbf16>
    %64 = vector.shape_cast %63 : vector<1x2x128xbf16> to vector<2x128xbf16>
    %65 = arith.extf %64 : vector<2x128xbf16> to vector<2x128xf32>
    %c0_31 = arith.constant 0 : index
    %c0_32 = arith.constant 0 : index
    %66 = vector.load %arg7[%c0_31, %c0_32] : memref<2x64xbf16, #tpu.memory_space<vmem>>, vector<2x32xbf16>
    %cst_33 = arith.constant dense<0.000000e+00> : vector<2x128xf32>
    %67 = tpu.matmul %66, %3, %cst_33 {dimension_numbers = #tpu.dot_dimension_numbers<[1], [0], [0], [1], [0, 0, 1, 1], [], []>} : vector<2x32xbf16>, vector<32x128xbf16>, vector<2x128xf32> -> vector<2x128xf32>
    %68 = arith.addf %65, %67 : vector<2x128xf32>
    %c0_34 = arith.constant 0 : index
    %c0_35 = arith.constant 0 : index
    %69 = vector.load %arg8[%c0_34, %c0_35] : memref<2x32xf32, #tpu.memory_space<vmem>>, vector<2x32xf32>
    %70 = vector.extract_strided_slice %68 {offsets = [0, 0], sizes = [2, 96], strides = [1, 1]} : vector<2x128xf32> to vector<2x96xf32>
    %71 = arith.negf %70 : vector<2x96xf32>
    %72 = math.exp %71 : vector<2x96xf32>
    %cst_36 = arith.constant 1.000000e+00 : f32
    %73 = vector.broadcast %cst_36 : f32 to vector<2x96xf32>
    %74 = arith.addf %73, %72 : vector<2x96xf32>
    %75 = arith.divf %73, %74 : vector<2x96xf32>
    %76 = vector.extract_strided_slice %75 {offsets = [0, 0], sizes = [2, 32], strides = [1, 1]} : vector<2x96xf32> to vector<2x32xf32>
    %77 = vector.extract_strided_slice %75 {offsets = [0, 32], sizes = [2, 32], strides = [1, 1]} : vector<2x96xf32> to vector<2x32xf32>
    %78 = vector.extract_strided_slice %75 {offsets = [0, 64], sizes = [2, 32], strides = [1, 1]} : vector<2x96xf32> to vector<2x32xf32>
    %79 = vector.extract_strided_slice %68 {offsets = [0, 96], sizes = [2, 32], strides = [1, 1]} : vector<2x128xf32> to vector<2x32xf32>
    %80 = math.tanh %79 : vector<2x32xf32>
    %81 = arith.mulf %77, %69 : vector<2x32xf32>
    %82 = arith.mulf %76, %80 : vector<2x32xf32>
    %83 = arith.addf %81, %82 : vector<2x32xf32>
    %84 = math.tanh %83 : vector<2x32xf32>
    %85 = arith.mulf %78, %84 : vector<2x32xf32>
    %c0_37 = arith.constant 0 : index
    %c0_38 = arith.constant 0 : index
    %86 = vector.load %arg8[%c0_37, %c0_38] : memref<2x32xf32, #tpu.memory_space<vmem>>, vector<2x32xf32>
    tpu.vector_store %arg8[%c0_37, %c0_38], %83 {strides = array<i32>} : memref<2x32xf32, #tpu.memory_space<vmem>>, vector<2x32xf32>,
    %87 = arith.truncf %85 : vector<2x32xf32> to vector<2x32xbf16>
    %c0_39 = arith.constant 0 : index
    %c0_40 = arith.constant 0 : index
    %88 = vector.load %arg7[%c0_39, %c0_40] : memref<2x64xbf16, #tpu.memory_space<vmem>>, vector<2x32xbf16>
    tpu.vector_store %arg7[%c0_39, %c0_40], %87 {strides = array<i32>} : memref<2x64xbf16, #tpu.memory_space<vmem>>, vector<2x32xbf16>,
    %c0_41 = arith.constant 0 : index
    %c0_42 = arith.constant 0 : index
    %89 = vector.load %arg7[%c0_41, %c0_42] : memref<2x64xbf16, #tpu.memory_space<vmem>>, vector<2x64xbf16>
    %cst_43 = arith.constant dense<0.000000e+00> : vector<2x128xf32>
    %90 = tpu.matmul %89, %4, %cst_43 {dimension_numbers = #tpu.dot_dimension_numbers<[1], [0], [0], [1], [0, 0, 1, 1], [], []>} : vector<2x64xbf16>, vector<64x128xbf16>, vector<2x128xf32> -> vector<2x128xf32>
    %91 = arith.addf %90, %7 : vector<2x128xf32>
    %c0_44 = arith.constant 0 : index
    %c0_45 = arith.constant 0 : index
    %92 = vector.load %arg9[%c0_44, %c0_45] : memref<2x32xf32, #tpu.memory_space<vmem>>, vector<2x32xf32>
    %93 = vector.extract_strided_slice %91 {offsets = [0, 0], sizes = [2, 96], strides = [1, 1]} : vector<2x128xf32> to vector<2x96xf32>
    %94 = arith.negf %93 : vector<2x96xf32>
    %95 = math.exp %94 : vector<2x96xf32>
    %cst_46 = arith.constant 1.000000e+00 : f32
    %96 = vector.broadcast %cst_46 : f32 to vector<2x96xf32>
    %97 = arith.addf %96, %95 : vector<2x96xf32>
    %98 = arith.divf %96, %97 : vector<2x96xf32>
    %99 = vector.extract_strided_slice %98 {offsets = [0, 0], sizes = [2, 32], strides = [1, 1]} : vector<2x96xf32> to vector<2x32xf32>
    %100 = vector.extract_strided_slice %98 {offsets = [0, 32], sizes = [2, 32], strides = [1, 1]} : vector<2x96xf32> to vector<2x32xf32>
    %101 = vector.extract_strided_slice %98 {offsets = [0, 64], sizes = [2, 32], strides = [1, 1]} : vector<2x96xf32> to vector<2x32xf32>
    %102 = vector.extract_strided_slice %91 {offsets = [0, 96], sizes = [2, 32], strides = [1, 1]} : vector<2x128xf32> to vector<2x32xf32>
    %103 = math.tanh %102 : vector<2x32xf32>
    %104 = arith.mulf %100, %92 : vector<2x32xf32>
    %105 = arith.mulf %99, %103 : vector<2x32xf32>
    %106 = arith.addf %104, %105 : vector<2x32xf32>
    %107 = math.tanh %106 : vector<2x32xf32>
    %108 = arith.mulf %101, %107 : vector<2x32xf32>
    %c0_47 = arith.constant 0 : index
    %c0_48 = arith.constant 0 : index
    %109 = vector.load %arg9[%c0_47, %c0_48] : memref<2x32xf32, #tpu.memory_space<vmem>>, vector<2x32xf32>
    tpu.vector_store %arg9[%c0_47, %c0_48], %106 {strides = array<i32>} : memref<2x32xf32, #tpu.memory_space<vmem>>, vector<2x32xf32>,
    %110 = arith.truncf %108 : vector<2x32xf32> to vector<2x32xbf16>
    %c0_49 = arith.constant 0 : index
    %c32_50 = arith.constant 32 : index
    %111 = vector.load %arg7[%c0_49, %c32_50] : memref<2x64xbf16, #tpu.memory_space<vmem>>, vector<2x32xbf16>
    tpu.vector_store %arg7[%c0_49, %c32_50], %110 {strides = array<i32>} : memref<2x64xbf16, #tpu.memory_space<vmem>>, vector<2x32xbf16>,
    %112 = arith.index_cast %c1_i32 : i32 to index
    %c0_51 = arith.constant 0 : index
    %c0_52 = arith.constant 0 : index
    %113 = vector.load %arg6[%112, %c0_51, %c0_52] : memref<8x2x32xf32, #tpu.memory_space<vmem>>, vector<1x2x32xf32>
    %114 = vector.shape_cast %113 : vector<1x2x32xf32> to vector<2x32xf32>
    %115 = vector.shape_cast %108 : vector<2x32xf32> to vector<1x2x32xf32>
    tpu.vector_store %arg6[%112, %c0_51, %c0_52], %115 {strides = array<i32>} : memref<8x2x32xf32, #tpu.memory_space<vmem>>, vector<1x2x32xf32>,
    %c2_i32 = arith.constant 2 : i32
    %116 = arith.index_cast %c2_i32 : i32 to index
    %c0_53 = arith.constant 0 : index
    %c0_54 = arith.constant 0 : index
    %117 = vector.load %arg2[%116, %c0_53, %c0_54] : memref<8x2x128xbf16, #tpu.memory_space<vmem>>, vector<1x2x128xbf16>
    %118 = vector.shape_cast %117 : vector<1x2x128xbf16> to vector<2x128xbf16>
    %119 = arith.extf %118 : vector<2x128xbf16> to vector<2x128xf32>
    %c0_55 = arith.constant 0 : index
    %c0_56 = arith.constant 0 : index
    %120 = vector.load %arg7[%c0_55, %c0_56] : memref<2x64xbf16, #tpu.memory_space<vmem>>, vector<2x32xbf16>
    %cst_57 = arith.constant dense<0.000000e+00> : vector<2x128xf32>
    %121 = tpu.matmul %120, %3, %cst_57 {dimension_numbers = #tpu.dot_dimension_numbers<[1], [0], [0], [1], [0, 0, 1, 1], [], []>} : vector<2x32xbf16>, vector<32x128xbf16>, vector<2x128xf32> -> vector<2x128xf32>
    %122 = arith.addf %119, %121 : vector<2x128xf32>
    %c0_58 = arith.constant 0 : index
    %c0_59 = arith.constant 0 : index
    %123 = vector.load %arg8[%c0_58, %c0_59] : memref<2x32xf32, #tpu.memory_space<vmem>>, vector<2x32xf32>
    %124 = vector.extract_strided_slice %122 {offsets = [0, 0], sizes = [2, 96], strides = [1, 1]} : vector<2x128xf32> to vector<2x96xf32>
    %125 = arith.negf %124 : vector<2x96xf32>
    %126 = math.exp %125 : vector<2x96xf32>
    %cst_60 = arith.constant 1.000000e+00 : f32
    %127 = vector.broadcast %cst_60 : f32 to vector<2x96xf32>
    %128 = arith.addf %127, %126 : vector<2x96xf32>
    %129 = arith.divf %127, %128 : vector<2x96xf32>
    %130 = vector.extract_strided_slice %129 {offsets = [0, 0], sizes = [2, 32], strides = [1, 1]} : vector<2x96xf32> to vector<2x32xf32>
    %131 = vector.extract_strided_slice %129 {offsets = [0, 32], sizes = [2, 32], strides = [1, 1]} : vector<2x96xf32> to vector<2x32xf32>
    %132 = vector.extract_strided_slice %129 {offsets = [0, 64], sizes = [2, 32], strides = [1, 1]} : vector<2x96xf32> to vector<2x32xf32>
    %133 = vector.extract_strided_slice %122 {offsets = [0, 96], sizes = [2, 32], strides = [1, 1]} : vector<2x128xf32> to vector<2x32xf32>
    %134 = math.tanh %133 : vector<2x32xf32>
    %135 = arith.mulf %131, %123 : vector<2x32xf32>
    %136 = arith.mulf %130, %134 : vector<2x32xf32>
    %137 = arith.addf %135, %136 : vector<2x32xf32>
    %138 = math.tanh %137 : vector<2x32xf32>
    %139 = arith.mulf %132, %138 : vector<2x32xf32>
    %c0_61 = arith.constant 0 : index
    %c0_62 = arith.constant 0 : index
    %140 = vector.load %arg8[%c0_61, %c0_62] : memref<2x32xf32, #tpu.memory_space<vmem>>, vector<2x32xf32>
    tpu.vector_store %arg8[%c0_61, %c0_62], %137 {strides = array<i32>} : memref<2x32xf32, #tpu.memory_space<vmem>>, vector<2x32xf32>,
    %141 = arith.truncf %139 : vector<2x32xf32> to vector<2x32xbf16>
    %c0_63 = arith.constant 0 : index
    %c0_64 = arith.constant 0 : index
    %142 = vector.load %arg7[%c0_63, %c0_64] : memref<2x64xbf16, #tpu.memory_space<vmem>>, vector<2x32xbf16>
    tpu.vector_store %arg7[%c0_63, %c0_64], %141 {strides = array<i32>} : memref<2x64xbf16, #tpu.memory_space<vmem>>, vector<2x32xbf16>,
    %c0_65 = arith.constant 0 : index
    %c0_66 = arith.constant 0 : index
    %143 = vector.load %arg7[%c0_65, %c0_66] : memref<2x64xbf16, #tpu.memory_space<vmem>>, vector<2x64xbf16>
    %cst_67 = arith.constant dense<0.000000e+00> : vector<2x128xf32>
    %144 = tpu.matmul %143, %4, %cst_67 {dimension_numbers = #tpu.dot_dimension_numbers<[1], [0], [0], [1], [0, 0, 1, 1], [], []>} : vector<2x64xbf16>, vector<64x128xbf16>, vector<2x128xf32> -> vector<2x128xf32>
    %145 = arith.addf %144, %7 : vector<2x128xf32>
    %c0_68 = arith.constant 0 : index
    %c0_69 = arith.constant 0 : index
    %146 = vector.load %arg9[%c0_68, %c0_69] : memref<2x32xf32, #tpu.memory_space<vmem>>, vector<2x32xf32>
    %147 = vector.extract_strided_slice %145 {offsets = [0, 0], sizes = [2, 96], strides = [1, 1]} : vector<2x128xf32> to vector<2x96xf32>
    %148 = arith.negf %147 : vector<2x96xf32>
    %149 = math.exp %148 : vector<2x96xf32>
    %cst_70 = arith.constant 1.000000e+00 : f32
    %150 = vector.broadcast %cst_70 : f32 to vector<2x96xf32>
    %151 = arith.addf %150, %149 : vector<2x96xf32>
    %152 = arith.divf %150, %151 : vector<2x96xf32>
    %153 = vector.extract_strided_slice %152 {offsets = [0, 0], sizes = [2, 32], strides = [1, 1]} : vector<2x96xf32> to vector<2x32xf32>
    %154 = vector.extract_strided_slice %152 {offsets = [0, 32], sizes = [2, 32], strides = [1, 1]} : vector<2x96xf32> to vector<2x32xf32>
    %155 = vector.extract_strided_slice %152 {offsets = [0, 64], sizes = [2, 32], strides = [1, 1]} : vector<2x96xf32> to vector<2x32xf32>
    %156 = vector.extract_strided_slice %145 {offsets = [0, 96], sizes = [2, 32], strides = [1, 1]} : vector<2x128xf32> to vector<2x32xf32>
    %157 = math.tanh %156 : vector<2x32xf32>
    %158 = arith.mulf %154, %146 : vector<2x32xf32>
    %159 = arith.mulf %153, %157 : vector<2x32xf32>
    %160 = arith.addf %158, %159 : vector<2x32xf32>
    %161 = math.tanh %160 : vector<2x32xf32>
    %162 = arith.mulf %155, %161 : vector<2x32xf32>
    %c0_71 = arith.constant 0 : index
    %c0_72 = arith.constant 0 : index
    %163 = vector.load %arg9[%c0_71, %c0_72] : memref<2x32xf32, #tpu.memory_space<vmem>>, vector<2x32xf32>
    tpu.vector_store %arg9[%c0_71, %c0_72], %160 {strides = array<i32>} : memref<2x32xf32, #tpu.memory_space<vmem>>, vector<2x32xf32>,
    %164 = arith.truncf %162 : vector<2x32xf32> to vector<2x32xbf16>
    %c0_73 = arith.constant 0 : index
    %c32_74 = arith.constant 32 : index
    %165 = vector.load %arg7[%c0_73, %c32_74] : memref<2x64xbf16, #tpu.memory_space<vmem>>, vector<2x32xbf16>
    tpu.vector_store %arg7[%c0_73, %c32_74], %164 {strides = array<i32>} : memref<2x64xbf16, #tpu.memory_space<vmem>>, vector<2x32xbf16>,
    %166 = arith.index_cast %c2_i32 : i32 to index
    %c0_75 = arith.constant 0 : index
    %c0_76 = arith.constant 0 : index
    %167 = vector.load %arg6[%166, %c0_75, %c0_76] : memref<8x2x32xf32, #tpu.memory_space<vmem>>, vector<1x2x32xf32>
    %168 = vector.shape_cast %167 : vector<1x2x32xf32> to vector<2x32xf32>
    %169 = vector.shape_cast %162 : vector<2x32xf32> to vector<1x2x32xf32>
    tpu.vector_store %arg6[%166, %c0_75, %c0_76], %169 {strides = array<i32>} : memref<8x2x32xf32, #tpu.memory_space<vmem>>, vector<1x2x32xf32>,
    %c3_i32 = arith.constant 3 : i32
    %170 = arith.index_cast %c3_i32 : i32 to index
    %c0_77 = arith.constant 0 : index
    %c0_78 = arith.constant 0 : index
    %171 = vector.load %arg2[%170, %c0_77, %c0_78] : memref<8x2x128xbf16, #tpu.memory_space<vmem>>, vector<1x2x128xbf16>
    %172 = vector.shape_cast %171 : vector<1x2x128xbf16> to vector<2x128xbf16>
    %173 = arith.extf %172 : vector<2x128xbf16> to vector<2x128xf32>
    %c0_79 = arith.constant 0 : index
    %c0_80 = arith.constant 0 : index
    %174 = vector.load %arg7[%c0_79, %c0_80] : memref<2x64xbf16, #tpu.memory_space<vmem>>, vector<2x32xbf16>
    %cst_81 = arith.constant dense<0.000000e+00> : vector<2x128xf32>
    %175 = tpu.matmul %174, %3, %cst_81 {dimension_numbers = #tpu.dot_dimension_numbers<[1], [0], [0], [1], [0, 0, 1, 1], [], []>} : vector<2x32xbf16>, vector<32x128xbf16>, vector<2x128xf32> -> vector<2x128xf32>
    %176 = arith.addf %173, %175 : vector<2x128xf32>
    %c0_82 = arith.constant 0 : index
    %c0_83 = arith.constant 0 : index
    %177 = vector.load %arg8[%c0_82, %c0_83] : memref<2x32xf32, #tpu.memory_space<vmem>>, vector<2x32xf32>
    %178 = vector.extract_strided_slice %176 {offsets = [0, 0], sizes = [2, 96], strides = [1, 1]} : vector<2x128xf32> to vector<2x96xf32>
    %179 = arith.negf %178 : vector<2x96xf32>
    %180 = math.exp %179 : vector<2x96xf32>
    %cst_84 = arith.constant 1.000000e+00 : f32
    %181 = vector.broadcast %cst_84 : f32 to vector<2x96xf32>
    %182 = arith.addf %181, %180 : vector<2x96xf32>
    %183 = arith.divf %181, %182 : vector<2x96xf32>
    %184 = vector.extract_strided_slice %183 {offsets = [0, 0], sizes = [2, 32], strides = [1, 1]} : vector<2x96xf32> to vector<2x32xf32>
    %185 = vector.extract_strided_slice %183 {offsets = [0, 32], sizes = [2, 32], strides = [1, 1]} : vector<2x96xf32> to vector<2x32xf32>
    %186 = vector.extract_strided_slice %183 {offsets = [0, 64], sizes = [2, 32], strides = [1, 1]} : vector<2x96xf32> to vector<2x32xf32>
    %187 = vector.extract_strided_slice %176 {offsets = [0, 96], sizes = [2, 32], strides = [1, 1]} : vector<2x128xf32> to vector<2x32xf32>
    %188 = math.tanh %187 : vector<2x32xf32>
    %189 = arith.mulf %185, %177 : vector<2x32xf32>
    %190 = arith.mulf %184, %188 : vector<2x32xf32>
    %191 = arith.addf %189, %190 : vector<2x32xf32>
    %192 = math.tanh %191 : vector<2x32xf32>
    %193 = arith.mulf %186, %192 : vector<2x32xf32>
    %c0_85 = arith.constant 0 : index
    %c0_86 = arith.constant 0 : index
    %194 = vector.load %arg8[%c0_85, %c0_86] : memref<2x32xf32, #tpu.memory_space<vmem>>, vector<2x32xf32>
    tpu.vector_store %arg8[%c0_85, %c0_86], %191 {strides = array<i32>} : memref<2x32xf32, #tpu.memory_space<vmem>>, vector<2x32xf32>,
    %195 = arith.truncf %193 : vector<2x32xf32> to vector<2x32xbf16>
    %c0_87 = arith.constant 0 : index
    %c0_88 = arith.constant 0 : index
    %196 = vector.load %arg7[%c0_87, %c0_88] : memref<2x64xbf16, #tpu.memory_space<vmem>>, vector<2x32xbf16>
    tpu.vector_store %arg7[%c0_87, %c0_88], %195 {strides = array<i32>} : memref<2x64xbf16, #tpu.memory_space<vmem>>, vector<2x32xbf16>,
    %c0_89 = arith.constant 0 : index
    %c0_90 = arith.constant 0 : index
    %197 = vector.load %arg7[%c0_89, %c0_90] : memref<2x64xbf16, #tpu.memory_space<vmem>>, vector<2x64xbf16>
    %cst_91 = arith.constant dense<0.000000e+00> : vector<2x128xf32>
    %198 = tpu.matmul %197, %4, %cst_91 {dimension_numbers = #tpu.dot_dimension_numbers<[1], [0], [0], [1], [0, 0, 1, 1], [], []>} : vector<2x64xbf16>, vector<64x128xbf16>, vector<2x128xf32> -> vector<2x128xf32>
    %199 = arith.addf %198, %7 : vector<2x128xf32>
    %c0_92 = arith.constant 0 : index
    %c0_93 = arith.constant 0 : index
    %200 = vector.load %arg9[%c0_92, %c0_93] : memref<2x32xf32, #tpu.memory_space<vmem>>, vector<2x32xf32>
    %201 = vector.extract_strided_slice %199 {offsets = [0, 0], sizes = [2, 96], strides = [1, 1]} : vector<2x128xf32> to vector<2x96xf32>
    %202 = arith.negf %201 : vector<2x96xf32>
    %203 = math.exp %202 : vector<2x96xf32>
    %cst_94 = arith.constant 1.000000e+00 : f32
    %204 = vector.broadcast %cst_94 : f32 to vector<2x96xf32>
    %205 = arith.addf %204, %203 : vector<2x96xf32>
    %206 = arith.divf %204, %205 : vector<2x96xf32>
    %207 = vector.extract_strided_slice %206 {offsets = [0, 0], sizes = [2, 32], strides = [1, 1]} : vector<2x96xf32> to vector<2x32xf32>
    %208 = vector.extract_strided_slice %206 {offsets = [0, 32], sizes = [2, 32], strides = [1, 1]} : vector<2x96xf32> to vector<2x32xf32>
    %209 = vector.extract_strided_slice %206 {offsets = [0, 64], sizes = [2, 32], strides = [1, 1]} : vector<2x96xf32> to vector<2x32xf32>
    %210 = vector.extract_strided_slice %199 {offsets = [0, 96], sizes = [2, 32], strides = [1, 1]} : vector<2x128xf32> to vector<2x32xf32>
    %211 = math.tanh %210 : vector<2x32xf32>
    %212 = arith.mulf %208, %200 : vector<2x32xf32>
    %213 = arith.mulf %207, %211 : vector<2x32xf32>
    %214 = arith.addf %212, %213 : vector<2x32xf32>
    %215 = math.tanh %214 : vector<2x32xf32>
    %216 = arith.mulf %209, %215 : vector<2x32xf32>
    %c0_95 = arith.constant 0 : index
    %c0_96 = arith.constant 0 : index
    %217 = vector.load %arg9[%c0_95, %c0_96] : memref<2x32xf32, #tpu.memory_space<vmem>>, vector<2x32xf32>
    tpu.vector_store %arg9[%c0_95, %c0_96], %214 {strides = array<i32>} : memref<2x32xf32, #tpu.memory_space<vmem>>, vector<2x32xf32>,
    %218 = arith.truncf %216 : vector<2x32xf32> to vector<2x32xbf16>
    %c0_97 = arith.constant 0 : index
    %c32_98 = arith.constant 32 : index
    %219 = vector.load %arg7[%c0_97, %c32_98] : memref<2x64xbf16, #tpu.memory_space<vmem>>, vector<2x32xbf16>
    tpu.vector_store %arg7[%c0_97, %c32_98], %218 {strides = array<i32>} : memref<2x64xbf16, #tpu.memory_space<vmem>>, vector<2x32xbf16>,
    %220 = arith.index_cast %c3_i32 : i32 to index
    %c0_99 = arith.constant 0 : index
    %c0_100 = arith.constant 0 : index
    %221 = vector.load %arg6[%220, %c0_99, %c0_100] : memref<8x2x32xf32, #tpu.memory_space<vmem>>, vector<1x2x32xf32>
    %222 = vector.shape_cast %221 : vector<1x2x32xf32> to vector<2x32xf32>
    %223 = vector.shape_cast %216 : vector<2x32xf32> to vector<1x2x32xf32>
    tpu.vector_store %arg6[%220, %c0_99, %c0_100], %223 {strides = array<i32>} : memref<8x2x32xf32, #tpu.memory_space<vmem>>, vector<1x2x32xf32>,
    %c4_i32 = arith.constant 4 : i32
    %224 = arith.index_cast %c4_i32 : i32 to index
    %c0_101 = arith.constant 0 : index
    %c0_102 = arith.constant 0 : index
    %225 = vector.load %arg2[%224, %c0_101, %c0_102] : memref<8x2x128xbf16, #tpu.memory_space<vmem>>, vector<1x2x128xbf16>
    %226 = vector.shape_cast %225 : vector<1x2x128xbf16> to vector<2x128xbf16>
    %227 = arith.extf %226 : vector<2x128xbf16> to vector<2x128xf32>
    %c0_103 = arith.constant 0 : index
    %c0_104 = arith.constant 0 : index
    %228 = vector.load %arg7[%c0_103, %c0_104] : memref<2x64xbf16, #tpu.memory_space<vmem>>, vector<2x32xbf16>
    %cst_105 = arith.constant dense<0.000000e+00> : vector<2x128xf32>
    %229 = tpu.matmul %228, %3, %cst_105 {dimension_numbers = #tpu.dot_dimension_numbers<[1], [0], [0], [1], [0, 0, 1, 1], [], []>} : vector<2x32xbf16>, vector<32x128xbf16>, vector<2x128xf32> -> vector<2x128xf32>
    %230 = arith.addf %227, %229 : vector<2x128xf32>
    %c0_106 = arith.constant 0 : index
    %c0_107 = arith.constant 0 : index
    %231 = vector.load %arg8[%c0_106, %c0_107] : memref<2x32xf32, #tpu.memory_space<vmem>>, vector<2x32xf32>
    %232 = vector.extract_strided_slice %230 {offsets = [0, 0], sizes = [2, 96], strides = [1, 1]} : vector<2x128xf32> to vector<2x96xf32>
    %233 = arith.negf %232 : vector<2x96xf32>
    %234 = math.exp %233 : vector<2x96xf32>
    %cst_108 = arith.constant 1.000000e+00 : f32
    %235 = vector.broadcast %cst_108 : f32 to vector<2x96xf32>
    %236 = arith.addf %235, %234 : vector<2x96xf32>
    %237 = arith.divf %235, %236 : vector<2x96xf32>
    %238 = vector.extract_strided_slice %237 {offsets = [0, 0], sizes = [2, 32], strides = [1, 1]} : vector<2x96xf32> to vector<2x32xf32>
    %239 = vector.extract_strided_slice %237 {offsets = [0, 32], sizes = [2, 32], strides = [1, 1]} : vector<2x96xf32> to vector<2x32xf32>
    %240 = vector.extract_strided_slice %237 {offsets = [0, 64], sizes = [2, 32], strides = [1, 1]} : vector<2x96xf32> to vector<2x32xf32>
    %241 = vector.extract_strided_slice %230 {offsets = [0, 96], sizes = [2, 32], strides = [1, 1]} : vector<2x128xf32> to vector<2x32xf32>
    %242 = math.tanh %241 : vector<2x32xf32>
    %243 = arith.mulf %239, %231 : vector<2x32xf32>
    %244 = arith.mulf %238, %242 : vector<2x32xf32>
    %245 = arith.addf %243, %244 : vector<2x32xf32>
    %246 = math.tanh %245 : vector<2x32xf32>
    %247 = arith.mulf %240, %246 : vector<2x32xf32>
    %c0_109 = arith.constant 0 : index
    %c0_110 = arith.constant 0 : index
    %248 = vector.load %arg8[%c0_109, %c0_110] : memref<2x32xf32, #tpu.memory_space<vmem>>, vector<2x32xf32>
    tpu.vector_store %arg8[%c0_109, %c0_110], %245 {strides = array<i32>} : memref<2x32xf32, #tpu.memory_space<vmem>>, vector<2x32xf32>,
    %249 = arith.truncf %247 : vector<2x32xf32> to vector<2x32xbf16>
    %c0_111 = arith.constant 0 : index
    %c0_112 = arith.constant 0 : index
    %250 = vector.load %arg7[%c0_111, %c0_112] : memref<2x64xbf16, #tpu.memory_space<vmem>>, vector<2x32xbf16>
    tpu.vector_store %arg7[%c0_111, %c0_112], %249 {strides = array<i32>} : memref<2x64xbf16, #tpu.memory_space<vmem>>, vector<2x32xbf16>,
    %c0_113 = arith.constant 0 : index
    %c0_114 = arith.constant 0 : index
    %251 = vector.load %arg7[%c0_113, %c0_114] : memref<2x64xbf16, #tpu.memory_space<vmem>>, vector<2x64xbf16>
    %cst_115 = arith.constant dense<0.000000e+00> : vector<2x128xf32>
    %252 = tpu.matmul %251, %4, %cst_115 {dimension_numbers = #tpu.dot_dimension_numbers<[1], [0], [0], [1], [0, 0, 1, 1], [], []>} : vector<2x64xbf16>, vector<64x128xbf16>, vector<2x128xf32> -> vector<2x128xf32>
    %253 = arith.addf %252, %7 : vector<2x128xf32>
    %c0_116 = arith.constant 0 : index
    %c0_117 = arith.constant 0 : index
    %254 = vector.load %arg9[%c0_116, %c0_117] : memref<2x32xf32, #tpu.memory_space<vmem>>, vector<2x32xf32>
    %255 = vector.extract_strided_slice %253 {offsets = [0, 0], sizes = [2, 96], strides = [1, 1]} : vector<2x128xf32> to vector<2x96xf32>
    %256 = arith.negf %255 : vector<2x96xf32>
    %257 = math.exp %256 : vector<2x96xf32>
    %cst_118 = arith.constant 1.000000e+00 : f32
    %258 = vector.broadcast %cst_118 : f32 to vector<2x96xf32>
    %259 = arith.addf %258, %257 : vector<2x96xf32>
    %260 = arith.divf %258, %259 : vector<2x96xf32>
    %261 = vector.extract_strided_slice %260 {offsets = [0, 0], sizes = [2, 32], strides = [1, 1]} : vector<2x96xf32> to vector<2x32xf32>
    %262 = vector.extract_strided_slice %260 {offsets = [0, 32], sizes = [2, 32], strides = [1, 1]} : vector<2x96xf32> to vector<2x32xf32>
    %263 = vector.extract_strided_slice %260 {offsets = [0, 64], sizes = [2, 32], strides = [1, 1]} : vector<2x96xf32> to vector<2x32xf32>
    %264 = vector.extract_strided_slice %253 {offsets = [0, 96], sizes = [2, 32], strides = [1, 1]} : vector<2x128xf32> to vector<2x32xf32>
    %265 = math.tanh %264 : vector<2x32xf32>
    %266 = arith.mulf %262, %254 : vector<2x32xf32>
    %267 = arith.mulf %261, %265 : vector<2x32xf32>
    %268 = arith.addf %266, %267 : vector<2x32xf32>
    %269 = math.tanh %268 : vector<2x32xf32>
    %270 = arith.mulf %263, %269 : vector<2x32xf32>
    %c0_119 = arith.constant 0 : index
    %c0_120 = arith.constant 0 : index
    %271 = vector.load %arg9[%c0_119, %c0_120] : memref<2x32xf32, #tpu.memory_space<vmem>>, vector<2x32xf32>
    tpu.vector_store %arg9[%c0_119, %c0_120], %268 {strides = array<i32>} : memref<2x32xf32, #tpu.memory_space<vmem>>, vector<2x32xf32>,
    %272 = arith.truncf %270 : vector<2x32xf32> to vector<2x32xbf16>
    %c0_121 = arith.constant 0 : index
    %c32_122 = arith.constant 32 : index
    %273 = vector.load %arg7[%c0_121, %c32_122] : memref<2x64xbf16, #tpu.memory_space<vmem>>, vector<2x32xbf16>
    tpu.vector_store %arg7[%c0_121, %c32_122], %272 {strides = array<i32>} : memref<2x64xbf16, #tpu.memory_space<vmem>>, vector<2x32xbf16>,
    %274 = arith.index_cast %c4_i32 : i32 to index
    %c0_123 = arith.constant 0 : index
    %c0_124 = arith.constant 0 : index
    %275 = vector.load %arg6[%274, %c0_123, %c0_124] : memref<8x2x32xf32, #tpu.memory_space<vmem>>, vector<1x2x32xf32>
    %276 = vector.shape_cast %275 : vector<1x2x32xf32> to vector<2x32xf32>
    %277 = vector.shape_cast %270 : vector<2x32xf32> to vector<1x2x32xf32>
    tpu.vector_store %arg6[%274, %c0_123, %c0_124], %277 {strides = array<i32>} : memref<8x2x32xf32, #tpu.memory_space<vmem>>, vector<1x2x32xf32>,
    %c5_i32 = arith.constant 5 : i32
    %278 = arith.index_cast %c5_i32 : i32 to index
    %c0_125 = arith.constant 0 : index
    %c0_126 = arith.constant 0 : index
    %279 = vector.load %arg2[%278, %c0_125, %c0_126] : memref<8x2x128xbf16, #tpu.memory_space<vmem>>, vector<1x2x128xbf16>
    %280 = vector.shape_cast %279 : vector<1x2x128xbf16> to vector<2x128xbf16>
    %281 = arith.extf %280 : vector<2x128xbf16> to vector<2x128xf32>
    %c0_127 = arith.constant 0 : index
    %c0_128 = arith.constant 0 : index
    %282 = vector.load %arg7[%c0_127, %c0_128] : memref<2x64xbf16, #tpu.memory_space<vmem>>, vector<2x32xbf16>
    %cst_129 = arith.constant dense<0.000000e+00> : vector<2x128xf32>
    %283 = tpu.matmul %282, %3, %cst_129 {dimension_numbers = #tpu.dot_dimension_numbers<[1], [0], [0], [1], [0, 0, 1, 1], [], []>} : vector<2x32xbf16>, vector<32x128xbf16>, vector<2x128xf32> -> vector<2x128xf32>
    %284 = arith.addf %281, %283 : vector<2x128xf32>
    %c0_130 = arith.constant 0 : index
    %c0_131 = arith.constant 0 : index
    %285 = vector.load %arg8[%c0_130, %c0_131] : memref<2x32xf32, #tpu.memory_space<vmem>>, vector<2x32xf32>
    %286 = vector.extract_strided_slice %284 {offsets = [0, 0], sizes = [2, 96], strides = [1, 1]} : vector<2x128xf32> to vector<2x96xf32>
    %287 = arith.negf %286 : vector<2x96xf32>
    %288 = math.exp %287 : vector<2x96xf32>
    %cst_132 = arith.constant 1.000000e+00 : f32
    %289 = vector.broadcast %cst_132 : f32 to vector<2x96xf32>
    %290 = arith.addf %289, %288 : vector<2x96xf32>
    %291 = arith.divf %289, %290 : vector<2x96xf32>
    %292 = vector.extract_strided_slice %291 {offsets = [0, 0], sizes = [2, 32], strides = [1, 1]} : vector<2x96xf32> to vector<2x32xf32>
    %293 = vector.extract_strided_slice %291 {offsets = [0, 32], sizes = [2, 32], strides = [1, 1]} : vector<2x96xf32> to vector<2x32xf32>
    %294 = vector.extract_strided_slice %291 {offsets = [0, 64], sizes = [2, 32], strides = [1, 1]} : vector<2x96xf32> to vector<2x32xf32>
    %295 = vector.extract_strided_slice %284 {offsets = [0, 96], sizes = [2, 32], strides = [1, 1]} : vector<2x128xf32> to vector<2x32xf32>
    %296 = math.tanh %295 : vector<2x32xf32>
    %297 = arith.mulf %293, %285 : vector<2x32xf32>
    %298 = arith.mulf %292, %296 : vector<2x32xf32>
    %299 = arith.addf %297, %298 : vector<2x32xf32>
    %300 = math.tanh %299 : vector<2x32xf32>
    %301 = arith.mulf %294, %300 : vector<2x32xf32>
    %c0_133 = arith.constant 0 : index
    %c0_134 = arith.constant 0 : index
    %302 = vector.load %arg8[%c0_133, %c0_134] : memref<2x32xf32, #tpu.memory_space<vmem>>, vector<2x32xf32>
    tpu.vector_store %arg8[%c0_133, %c0_134], %299 {strides = array<i32>} : memref<2x32xf32, #tpu.memory_space<vmem>>, vector<2x32xf32>,
    %303 = arith.truncf %301 : vector<2x32xf32> to vector<2x32xbf16>
    %c0_135 = arith.constant 0 : index
    %c0_136 = arith.constant 0 : index
    %304 = vector.load %arg7[%c0_135, %c0_136] : memref<2x64xbf16, #tpu.memory_space<vmem>>, vector<2x32xbf16>
    tpu.vector_store %arg7[%c0_135, %c0_136], %303 {strides = array<i32>} : memref<2x64xbf16, #tpu.memory_space<vmem>>, vector<2x32xbf16>,
    %c0_137 = arith.constant 0 : index
    %c0_138 = arith.constant 0 : index
    %305 = vector.load %arg7[%c0_137, %c0_138] : memref<2x64xbf16, #tpu.memory_space<vmem>>, vector<2x64xbf16>
    %cst_139 = arith.constant dense<0.000000e+00> : vector<2x128xf32>
    %306 = tpu.matmul %305, %4, %cst_139 {dimension_numbers = #tpu.dot_dimension_numbers<[1], [0], [0], [1], [0, 0, 1, 1], [], []>} : vector<2x64xbf16>, vector<64x128xbf16>, vector<2x128xf32> -> vector<2x128xf32>
    %307 = arith.addf %306, %7 : vector<2x128xf32>
    %c0_140 = arith.constant 0 : index
    %c0_141 = arith.constant 0 : index
    %308 = vector.load %arg9[%c0_140, %c0_141] : memref<2x32xf32, #tpu.memory_space<vmem>>, vector<2x32xf32>
    %309 = vector.extract_strided_slice %307 {offsets = [0, 0], sizes = [2, 96], strides = [1, 1]} : vector<2x128xf32> to vector<2x96xf32>
    %310 = arith.negf %309 : vector<2x96xf32>
    %311 = math.exp %310 : vector<2x96xf32>
    %cst_142 = arith.constant 1.000000e+00 : f32
    %312 = vector.broadcast %cst_142 : f32 to vector<2x96xf32>
    %313 = arith.addf %312, %311 : vector<2x96xf32>
    %314 = arith.divf %312, %313 : vector<2x96xf32>
    %315 = vector.extract_strided_slice %314 {offsets = [0, 0], sizes = [2, 32], strides = [1, 1]} : vector<2x96xf32> to vector<2x32xf32>
    %316 = vector.extract_strided_slice %314 {offsets = [0, 32], sizes = [2, 32], strides = [1, 1]} : vector<2x96xf32> to vector<2x32xf32>
    %317 = vector.extract_strided_slice %314 {offsets = [0, 64], sizes = [2, 32], strides = [1, 1]} : vector<2x96xf32> to vector<2x32xf32>
    %318 = vector.extract_strided_slice %307 {offsets = [0, 96], sizes = [2, 32], strides = [1, 1]} : vector<2x128xf32> to vector<2x32xf32>
    %319 = math.tanh %318 : vector<2x32xf32>
    %320 = arith.mulf %316, %308 : vector<2x32xf32>
    %321 = arith.mulf %315, %319 : vector<2x32xf32>
    %322 = arith.addf %320, %321 : vector<2x32xf32>
    %323 = math.tanh %322 : vector<2x32xf32>
    %324 = arith.mulf %317, %323 : vector<2x32xf32>
    %c0_143 = arith.constant 0 : index
    %c0_144 = arith.constant 0 : index
    %325 = vector.load %arg9[%c0_143, %c0_144] : memref<2x32xf32, #tpu.memory_space<vmem>>, vector<2x32xf32>
    tpu.vector_store %arg9[%c0_143, %c0_144], %322 {strides = array<i32>} : memref<2x32xf32, #tpu.memory_space<vmem>>, vector<2x32xf32>,
    %326 = arith.truncf %324 : vector<2x32xf32> to vector<2x32xbf16>
    %c0_145 = arith.constant 0 : index
    %c32_146 = arith.constant 32 : index
    %327 = vector.load %arg7[%c0_145, %c32_146] : memref<2x64xbf16, #tpu.memory_space<vmem>>, vector<2x32xbf16>
    tpu.vector_store %arg7[%c0_145, %c32_146], %326 {strides = array<i32>} : memref<2x64xbf16, #tpu.memory_space<vmem>>, vector<2x32xbf16>,
    %328 = arith.index_cast %c5_i32 : i32 to index
    %c0_147 = arith.constant 0 : index
    %c0_148 = arith.constant 0 : index
    %329 = vector.load %arg6[%328, %c0_147, %c0_148] : memref<8x2x32xf32, #tpu.memory_space<vmem>>, vector<1x2x32xf32>
    %330 = vector.shape_cast %329 : vector<1x2x32xf32> to vector<2x32xf32>
    %331 = vector.shape_cast %324 : vector<2x32xf32> to vector<1x2x32xf32>
    tpu.vector_store %arg6[%328, %c0_147, %c0_148], %331 {strides = array<i32>} : memref<8x2x32xf32, #tpu.memory_space<vmem>>, vector<1x2x32xf32>,
    %c6_i32 = arith.constant 6 : i32
    %332 = arith.index_cast %c6_i32 : i32 to index
    %c0_149 = arith.constant 0 : index
    %c0_150 = arith.constant 0 : index
    %333 = vector.load %arg2[%332, %c0_149, %c0_150] : memref<8x2x128xbf16, #tpu.memory_space<vmem>>, vector<1x2x128xbf16>
    %334 = vector.shape_cast %333 : vector<1x2x128xbf16> to vector<2x128xbf16>
    %335 = arith.extf %334 : vector<2x128xbf16> to vector<2x128xf32>
    %c0_151 = arith.constant 0 : index
    %c0_152 = arith.constant 0 : index
    %336 = vector.load %arg7[%c0_151, %c0_152] : memref<2x64xbf16, #tpu.memory_space<vmem>>, vector<2x32xbf16>
    %cst_153 = arith.constant dense<0.000000e+00> : vector<2x128xf32>
    %337 = tpu.matmul %336, %3, %cst_153 {dimension_numbers = #tpu.dot_dimension_numbers<[1], [0], [0], [1], [0, 0, 1, 1], [], []>} : vector<2x32xbf16>, vector<32x128xbf16>, vector<2x128xf32> -> vector<2x128xf32>
    %338 = arith.addf %335, %337 : vector<2x128xf32>
    %c0_154 = arith.constant 0 : index
    %c0_155 = arith.constant 0 : index
    %339 = vector.load %arg8[%c0_154, %c0_155] : memref<2x32xf32, #tpu.memory_space<vmem>>, vector<2x32xf32>
    %340 = vector.extract_strided_slice %338 {offsets = [0, 0], sizes = [2, 96], strides = [1, 1]} : vector<2x128xf32> to vector<2x96xf32>
    %341 = arith.negf %340 : vector<2x96xf32>
    %342 = math.exp %341 : vector<2x96xf32>
    %cst_156 = arith.constant 1.000000e+00 : f32
    %343 = vector.broadcast %cst_156 : f32 to vector<2x96xf32>
    %344 = arith.addf %343, %342 : vector<2x96xf32>
    %345 = arith.divf %343, %344 : vector<2x96xf32>
    %346 = vector.extract_strided_slice %345 {offsets = [0, 0], sizes = [2, 32], strides = [1, 1]} : vector<2x96xf32> to vector<2x32xf32>
    %347 = vector.extract_strided_slice %345 {offsets = [0, 32], sizes = [2, 32], strides = [1, 1]} : vector<2x96xf32> to vector<2x32xf32>
    %348 = vector.extract_strided_slice %345 {offsets = [0, 64], sizes = [2, 32], strides = [1, 1]} : vector<2x96xf32> to vector<2x32xf32>
    %349 = vector.extract_strided_slice %338 {offsets = [0, 96], sizes = [2, 32], strides = [1, 1]} : vector<2x128xf32> to vector<2x32xf32>
    %350 = math.tanh %349 : vector<2x32xf32>
    %351 = arith.mulf %347, %339 : vector<2x32xf32>
    %352 = arith.mulf %346, %350 : vector<2x32xf32>
    %353 = arith.addf %351, %352 : vector<2x32xf32>
    %354 = math.tanh %353 : vector<2x32xf32>
    %355 = arith.mulf %348, %354 : vector<2x32xf32>
    %c0_157 = arith.constant 0 : index
    %c0_158 = arith.constant 0 : index
    %356 = vector.load %arg8[%c0_157, %c0_158] : memref<2x32xf32, #tpu.memory_space<vmem>>, vector<2x32xf32>
    tpu.vector_store %arg8[%c0_157, %c0_158], %353 {strides = array<i32>} : memref<2x32xf32, #tpu.memory_space<vmem>>, vector<2x32xf32>,
    %357 = arith.truncf %355 : vector<2x32xf32> to vector<2x32xbf16>
    %c0_159 = arith.constant 0 : index
    %c0_160 = arith.constant 0 : index
    %358 = vector.load %arg7[%c0_159, %c0_160] : memref<2x64xbf16, #tpu.memory_space<vmem>>, vector<2x32xbf16>
    tpu.vector_store %arg7[%c0_159, %c0_160], %357 {strides = array<i32>} : memref<2x64xbf16, #tpu.memory_space<vmem>>, vector<2x32xbf16>,
    %c0_161 = arith.constant 0 : index
    %c0_162 = arith.constant 0 : index
    %359 = vector.load %arg7[%c0_161, %c0_162] : memref<2x64xbf16, #tpu.memory_space<vmem>>, vector<2x64xbf16>
    %cst_163 = arith.constant dense<0.000000e+00> : vector<2x128xf32>
    %360 = tpu.matmul %359, %4, %cst_163 {dimension_numbers = #tpu.dot_dimension_numbers<[1], [0], [0], [1], [0, 0, 1, 1], [], []>} : vector<2x64xbf16>, vector<64x128xbf16>, vector<2x128xf32> -> vector<2x128xf32>
    %361 = arith.addf %360, %7 : vector<2x128xf32>
    %c0_164 = arith.constant 0 : index
    %c0_165 = arith.constant 0 : index
    %362 = vector.load %arg9[%c0_164, %c0_165] : memref<2x32xf32, #tpu.memory_space<vmem>>, vector<2x32xf32>
    %363 = vector.extract_strided_slice %361 {offsets = [0, 0], sizes = [2, 96], strides = [1, 1]} : vector<2x128xf32> to vector<2x96xf32>
    %364 = arith.negf %363 : vector<2x96xf32>
    %365 = math.exp %364 : vector<2x96xf32>
    %cst_166 = arith.constant 1.000000e+00 : f32
    %366 = vector.broadcast %cst_166 : f32 to vector<2x96xf32>
    %367 = arith.addf %366, %365 : vector<2x96xf32>
    %368 = arith.divf %366, %367 : vector<2x96xf32>
    %369 = vector.extract_strided_slice %368 {offsets = [0, 0], sizes = [2, 32], strides = [1, 1]} : vector<2x96xf32> to vector<2x32xf32>
    %370 = vector.extract_strided_slice %368 {offsets = [0, 32], sizes = [2, 32], strides = [1, 1]} : vector<2x96xf32> to vector<2x32xf32>
    %371 = vector.extract_strided_slice %368 {offsets = [0, 64], sizes = [2, 32], strides = [1, 1]} : vector<2x96xf32> to vector<2x32xf32>
    %372 = vector.extract_strided_slice %361 {offsets = [0, 96], sizes = [2, 32], strides = [1, 1]} : vector<2x128xf32> to vector<2x32xf32>
    %373 = math.tanh %372 : vector<2x32xf32>
    %374 = arith.mulf %370, %362 : vector<2x32xf32>
    %375 = arith.mulf %369, %373 : vector<2x32xf32>
    %376 = arith.addf %374, %375 : vector<2x32xf32>
    %377 = math.tanh %376 : vector<2x32xf32>
    %378 = arith.mulf %371, %377 : vector<2x32xf32>
    %c0_167 = arith.constant 0 : index
    %c0_168 = arith.constant 0 : index
    %379 = vector.load %arg9[%c0_167, %c0_168] : memref<2x32xf32, #tpu.memory_space<vmem>>, vector<2x32xf32>
    tpu.vector_store %arg9[%c0_167, %c0_168], %376 {strides = array<i32>} : memref<2x32xf32, #tpu.memory_space<vmem>>, vector<2x32xf32>,
    %380 = arith.truncf %378 : vector<2x32xf32> to vector<2x32xbf16>
    %c0_169 = arith.constant 0 : index
    %c32_170 = arith.constant 32 : index
    %381 = vector.load %arg7[%c0_169, %c32_170] : memref<2x64xbf16, #tpu.memory_space<vmem>>, vector<2x32xbf16>
    tpu.vector_store %arg7[%c0_169, %c32_170], %380 {strides = array<i32>} : memref<2x64xbf16, #tpu.memory_space<vmem>>, vector<2x32xbf16>,
    %382 = arith.index_cast %c6_i32 : i32 to index
    %c0_171 = arith.constant 0 : index
    %c0_172 = arith.constant 0 : index
    %383 = vector.load %arg6[%382, %c0_171, %c0_172] : memref<8x2x32xf32, #tpu.memory_space<vmem>>, vector<1x2x32xf32>
    %384 = vector.shape_cast %383 : vector<1x2x32xf32> to vector<2x32xf32>
    %385 = vector.shape_cast %378 : vector<2x32xf32> to vector<1x2x32xf32>
    tpu.vector_store %arg6[%382, %c0_171, %c0_172], %385 {strides = array<i32>} : memref<8x2x32xf32, #tpu.memory_space<vmem>>, vector<1x2x32xf32>,
    %c7_i32 = arith.constant 7 : i32
    %386 = arith.index_cast %c7_i32 : i32 to index
    %c0_173 = arith.constant 0 : index
    %c0_174 = arith.constant 0 : index
    %387 = vector.load %arg2[%386, %c0_173, %c0_174] : memref<8x2x128xbf16, #tpu.memory_space<vmem>>, vector<1x2x128xbf16>
    %388 = vector.shape_cast %387 : vector<1x2x128xbf16> to vector<2x128xbf16>
    %389 = arith.extf %388 : vector<2x128xbf16> to vector<2x128xf32>
    %c0_175 = arith.constant 0 : index
    %c0_176 = arith.constant 0 : index
    %390 = vector.load %arg7[%c0_175, %c0_176] : memref<2x64xbf16, #tpu.memory_space<vmem>>, vector<2x32xbf16>
    %cst_177 = arith.constant dense<0.000000e+00> : vector<2x128xf32>
    %391 = tpu.matmul %390, %3, %cst_177 {dimension_numbers = #tpu.dot_dimension_numbers<[1], [0], [0], [1], [0, 0, 1, 1], [], []>} : vector<2x32xbf16>, vector<32x128xbf16>, vector<2x128xf32> -> vector<2x128xf32>
    %392 = arith.addf %389, %391 : vector<2x128xf32>
    %c0_178 = arith.constant 0 : index
    %c0_179 = arith.constant 0 : index
    %393 = vector.load %arg8[%c0_178, %c0_179] : memref<2x32xf32, #tpu.memory_space<vmem>>, vector<2x32xf32>
    %394 = vector.extract_strided_slice %392 {offsets = [0, 0], sizes = [2, 96], strides = [1, 1]} : vector<2x128xf32> to vector<2x96xf32>
    %395 = arith.negf %394 : vector<2x96xf32>
    %396 = math.exp %395 : vector<2x96xf32>
    %cst_180 = arith.constant 1.000000e+00 : f32
    %397 = vector.broadcast %cst_180 : f32 to vector<2x96xf32>
    %398 = arith.addf %397, %396 : vector<2x96xf32>
    %399 = arith.divf %397, %398 : vector<2x96xf32>
    %400 = vector.extract_strided_slice %399 {offsets = [0, 0], sizes = [2, 32], strides = [1, 1]} : vector<2x96xf32> to vector<2x32xf32>
    %401 = vector.extract_strided_slice %399 {offsets = [0, 32], sizes = [2, 32], strides = [1, 1]} : vector<2x96xf32> to vector<2x32xf32>
    %402 = vector.extract_strided_slice %399 {offsets = [0, 64], sizes = [2, 32], strides = [1, 1]} : vector<2x96xf32> to vector<2x32xf32>
    %403 = vector.extract_strided_slice %392 {offsets = [0, 96], sizes = [2, 32], strides = [1, 1]} : vector<2x128xf32> to vector<2x32xf32>
    %404 = math.tanh %403 : vector<2x32xf32>
    %405 = arith.mulf %401, %393 : vector<2x32xf32>
    %406 = arith.mulf %400, %404 : vector<2x32xf32>
    %407 = arith.addf %405, %406 : vector<2x32xf32>
    %408 = math.tanh %407 : vector<2x32xf32>
    %409 = arith.mulf %402, %408 : vector<2x32xf32>
    %c0_181 = arith.constant 0 : index
    %c0_182 = arith.constant 0 : index
    %410 = vector.load %arg8[%c0_181, %c0_182] : memref<2x32xf32, #tpu.memory_space<vmem>>, vector<2x32xf32>
    tpu.vector_store %arg8[%c0_181, %c0_182], %407 {strides = array<i32>} : memref<2x32xf32, #tpu.memory_space<vmem>>, vector<2x32xf32>,
    %411 = arith.truncf %409 : vector<2x32xf32> to vector<2x32xbf16>
    %c0_183 = arith.constant 0 : index
    %c0_184 = arith.constant 0 : index
    %412 = vector.load %arg7[%c0_183, %c0_184] : memref<2x64xbf16, #tpu.memory_space<vmem>>, vector<2x32xbf16>
    tpu.vector_store %arg7[%c0_183, %c0_184], %411 {strides = array<i32>} : memref<2x64xbf16, #tpu.memory_space<vmem>>, vector<2x32xbf16>,
    %c0_185 = arith.constant 0 : index
    %c0_186 = arith.constant 0 : index
    %413 = vector.load %arg7[%c0_185, %c0_186] : memref<2x64xbf16, #tpu.memory_space<vmem>>, vector<2x64xbf16>
    %cst_187 = arith.constant dense<0.000000e+00> : vector<2x128xf32>
    %414 = tpu.matmul %413, %4, %cst_187 {dimension_numbers = #tpu.dot_dimension_numbers<[1], [0], [0], [1], [0, 0, 1, 1], [], []>} : vector<2x64xbf16>, vector<64x128xbf16>, vector<2x128xf32> -> vector<2x128xf32>
    %415 = arith.addf %414, %7 : vector<2x128xf32>
    %c0_188 = arith.constant 0 : index
    %c0_189 = arith.constant 0 : index
    %416 = vector.load %arg9[%c0_188, %c0_189] : memref<2x32xf32, #tpu.memory_space<vmem>>, vector<2x32xf32>
    %417 = vector.extract_strided_slice %415 {offsets = [0, 0], sizes = [2, 96], strides = [1, 1]} : vector<2x128xf32> to vector<2x96xf32>
    %418 = arith.negf %417 : vector<2x96xf32>
    %419 = math.exp %418 : vector<2x96xf32>
    %cst_190 = arith.constant 1.000000e+00 : f32
    %420 = vector.broadcast %cst_190 : f32 to vector<2x96xf32>
    %421 = arith.addf %420, %419 : vector<2x96xf32>
    %422 = arith.divf %420, %421 : vector<2x96xf32>
    %423 = vector.extract_strided_slice %422 {offsets = [0, 0], sizes = [2, 32], strides = [1, 1]} : vector<2x96xf32> to vector<2x32xf32>
    %424 = vector.extract_strided_slice %422 {offsets = [0, 32], sizes = [2, 32], strides = [1, 1]} : vector<2x96xf32> to vector<2x32xf32>
    %425 = vector.extract_strided_slice %422 {offsets = [0, 64], sizes = [2, 32], strides = [1, 1]} : vector<2x96xf32> to vector<2x32xf32>
    %426 = vector.extract_strided_slice %415 {offsets = [0, 96], sizes = [2, 32], strides = [1, 1]} : vector<2x128xf32> to vector<2x32xf32>
    %427 = math.tanh %426 : vector<2x32xf32>
    %428 = arith.mulf %424, %416 : vector<2x32xf32>
    %429 = arith.mulf %423, %427 : vector<2x32xf32>
    %430 = arith.addf %428, %429 : vector<2x32xf32>
    %431 = math.tanh %430 : vector<2x32xf32>
    %432 = arith.mulf %425, %431 : vector<2x32xf32>
    %c0_191 = arith.constant 0 : index
    %c0_192 = arith.constant 0 : index
    %433 = vector.load %arg9[%c0_191, %c0_192] : memref<2x32xf32, #tpu.memory_space<vmem>>, vector<2x32xf32>
    tpu.vector_store %arg9[%c0_191, %c0_192], %430 {strides = array<i32>} : memref<2x32xf32, #tpu.memory_space<vmem>>, vector<2x32xf32>,
    %434 = arith.truncf %432 : vector<2x32xf32> to vector<2x32xbf16>
    %c0_193 = arith.constant 0 : index
    %c32_194 = arith.constant 32 : index
    %435 = vector.load %arg7[%c0_193, %c32_194] : memref<2x64xbf16, #tpu.memory_space<vmem>>, vector<2x32xbf16>
    tpu.vector_store %arg7[%c0_193, %c32_194], %434 {strides = array<i32>} : memref<2x64xbf16, #tpu.memory_space<vmem>>, vector<2x32xbf16>,
    %436 = arith.index_cast %c7_i32 : i32 to index
    %c0_195 = arith.constant 0 : index
    %c0_196 = arith.constant 0 : index
    %437 = vector.load %arg6[%436, %c0_195, %c0_196] : memref<8x2x32xf32, #tpu.memory_space<vmem>>, vector<1x2x32xf32>
    %438 = vector.shape_cast %437 : vector<1x2x32xf32> to vector<2x32xf32>
    %439 = vector.shape_cast %432 : vector<2x32xf32> to vector<1x2x32xf32>
    tpu.vector_store %arg6[%436, %c0_195, %c0_196], %439 {strides = array<i32>} : memref<8x2x32xf32, #tpu.memory_space<vmem>>, vector<1x2x32xf32>,
    %c8_i32 = arith.constant 8 : i32
    return
  }
  func.func @transform_0(%arg0: i32, %arg1: i32) -> (i32, i32, i32) {
    %c0_i32 = arith.constant 0 : i32
    %c0_i32_0 = arith.constant 0 : i32
    return %arg1, %arg0, %c0_i32 : i32, i32, i32
  }
  func.func @transform_1(%arg0: i32, %arg1: i32) -> (i32, i32) {
    %c0_i32 = arith.constant 0 : i32
    %c0_i32_0 = arith.constant 0 : i32
    %c0_i32_1 = arith.constant 0 : i32
    return %c0_i32, %c0_i32_0 : i32, i32
  }
  func.func @transform_2(%arg0: i32, %arg1: i32) -> (i32, i32) {
    %c0_i32 = arith.constant 0 : i32
    %c0_i32_0 = arith.constant 0 : i32
    %c0_i32_1 = arith.constant 0 : i32
    return %c0_i32, %c0_i32_0 : i32, i32
  }
  func.func @transform_3(%arg0: i32, %arg1: i32) -> (i32, i32) {
    %c0_i32 = arith.constant 0 : i32
    %c0_i32_0 = arith.constant 0 : i32
    %c0_i32_1 = arith.constant 0 : i32
    return %c0_i32, %c0_i32_0 : i32, i32
  }
  func.func @transform_4(%arg0: i32, %arg1: i32) -> (i32, i32, i32) {
    %c0_i32 = arith.constant 0 : i32
    %c0_i32_0 = arith.constant 0 : i32
    return %arg1, %arg0, %c0_i32 : i32, i32, i32
  }
}

</mosaic_0001>

<bundles_post_ra>
// kernel: tpu_custom_call.1
= control target key start
LH: loop header
LB: loop body
LE: loop exit
PB: predicated region body
PF: predicated region fallthrough
CT: control target
= control target key end

     0   :  { %9 = vsyncpa [#allocation6], 0  ;;  %s2935_s0 = inlined_call_operand.hbm [shape: bf16[8,2,128], index: 0, kind: input, shape index: {}]   ;;  %s2936_s1 = inlined_call_operand.hbm [shape: bf16[32,128], index: 1, kind: input, shape index: {}]   ;;  %s2937_s2 = inlined_call_operand.hbm [shape: bf16[64,128], index: 2, kind: input, shape index: {}]   ;;  %s2938_s3 = inlined_call_operand.vmem [shape: f32[1,128], index: 3, kind: input, shape index: {}]   ;;  %s2939_s4 = inlined_call_operand.hbm [shape: f32[8,2,32], index: 4, kind: output, shape index: {}]  }
   0x1   :  { %10 = vsyncpa [#allocation9], 0 }
   0x2   :  { %11 = vsyncpa [#allocation7], 0  ;;  %s2427_s15 = smov [#allocation8]   ;;  %s2333_s19 = scalar_lea.hbm %s2936_s1, 256 }
   0x3   :  { %s29_s16 = sshll.u32 %s2427_s15, 4  ;;  %p2334_p0 = scmp.ne.s32.totalorder %s2936_s1, %s2333_s19  ;;  %s30_s16 = int_to_ptr.vmem [resolvable:$true] %s29_s16 }
   0x4   :  { %p2337_p1 = scmp.lt.u32.totalorder %s2333_s19, %s2936_s1 }
   0x6   :  { %p2339_p2 = pnand %p2337_p1, %p2334_p0 }
   0x8   :  { %2342 = shalt.err (!%p2339_p2)
}
   0x9   :  { %s2343_s24 = scalar_lea.vmem %s30_s16, 256  ;;  %p2348_p4 = scmp.lt.s32.totalorder %s30_s16, %s30_s16 }
   0xa   :  { %p2344_p3 = scmp.ne.s32.totalorder %s30_s16, %s2343_s24  ;;  %p2349_p5 = scmp.lt.s32.totalorder %s2343_s24, %s2343_s24 }
   0xc   :  { %p2350_p6 = por %p2349_p5, %p2348_p4 }
   0xe   :  { %p2351_p7 = pnand %p2350_p6, %p2344_p3 }
  0x10   :  { %2354 = shalt.err (!%p2351_p7)
}
  0x11   :  { %s2428_s25 = smov 64   ;;  %s2429_s26 = smov 4  }
  0x12   :  { %35 = dma.hbm_to_vmem [thread:$0]  %s2936_s1, 256, %s30_s16, [#allocation9], %s2428_s25, %s2428_s25, %s2429_s26  }
  0x13   :  { %s2430_s29 = smov [#allocation5]   ;;  %s2355_s7 = scalar_lea.hbm %s2935_s0, 128 }
  0x14   :  { %s17_s30 = sshll.u32 %s2430_s29, 4  ;;  %p2356_p8 = scmp.ne.s32.totalorder %s2935_s0, %s2355_s7  ;;  %s18_s30 = int_to_ptr.vmem [resolvable:$true] %s17_s30 }
  0x15   :  { %p2359_p9 = scmp.lt.u32.totalorder %s2355_s7, %s2935_s0 }
  0x17   :  { %p2361_p10 = pnand %p2359_p9, %p2356_p8 }
  0x19   :  { %2364 = shalt.err (!%p2361_p10)
}
  0x1a   :  { %s2365_s12 = scalar_lea.vmem %s18_s30, 128  ;;  %p2370_p12 = scmp.lt.s32.totalorder %s18_s30, %s18_s30 }
  0x1b   :  { %p2366_p11 = scmp.ne.s32.totalorder %s18_s30, %s2365_s12  ;;  %p2371_p13 = scmp.lt.s32.totalorder %s2365_s12, %s2365_s12 }
  0x1d   :  { %p2372_p0 = por %p2371_p13, %p2370_p12 }
  0x1f   :  { %p2373_p1 = pnand %p2372_p0, %p2366_p11 }
  0x21   :  { %2376 = shalt.err (!%p2373_p1)
}
  0x22   :  { %s2431_s1 = smov 16   ;;  %s2432_s13 = smov 1  }
  0x23   :  { %23 = dma.hbm_to_vmem [thread:$0]  %s2935_s0, 128, %s18_s30, [#allocation6], %s2431_s1, %s2431_s1, %s2432_s13  }
  0x24   :  { %s2433_s16 = smov [#allocation10]   ;;  %s2377_s20 = scalar_lea.hbm %s2937_s2, 512 }
  0x25   :  { %s41_s17 = sshll.u32 %s2433_s16, 4  ;;  %p2378_p2 = scmp.ne.s32.totalorder %s2937_s2, %s2377_s20  ;;  %s42_s17 = int_to_ptr.vmem [resolvable:$true] %s41_s17 }
  0x26   :  { %p2381_p3 = scmp.lt.u32.totalorder %s2377_s20, %s2937_s2 }
  0x28   :  { %p2383_p4 = pnand %p2381_p3, %p2378_p2 }
  0x2a   :  { %2386 = shalt.err (!%p2383_p4)
}
  0x2b   :  { %s2387_s27 = scalar_lea.vmem %s42_s17, 512  ;;  %p2392_p6 = scmp.lt.s32.totalorder %s42_s17, %s42_s17 }
  0x2c   :  { %p2388_p5 = scmp.ne.s32.totalorder %s42_s17, %s2387_s27  ;;  %p2393_p7 = scmp.lt.s32.totalorder %s2387_s27, %s2387_s27 }
  0x2e   :  { %p2394_p8 = por %p2393_p7, %p2392_p6 }
  0x30   :  { %p2395_p9 = pnand %p2394_p8, %p2388_p5 }
  0x32   :  { %2398 = shalt.err (!%p2395_p9)
}
  0x33   :  { %47 = dma.hbm_to_vmem [thread:$0]  %s2937_s2, 512, %s42_s17, [#allocation9], %s2428_s25, %s2428_s25, %s2429_s26  }
  0x34   :  { %2421 = dma.done.wait [#allocation6], 128  }
  0x35   :  { %2422 = vsyncadd [#allocation6], 4294967168 }
  0x36   :  { %2423 = dma.done.wait [#allocation9], 768  }
  0x37   :  { %2424 = vsyncadd [#allocation9], 4294966528  ;;  %vm64_vm0 = vcmask 516096   ;;  %v2434_v0 = vmov 0.0   ;;  %vm2435_vm1 = vmmov 0   ;;  %v2436_v1 = vmov 0  }
  0x38   :  { %2016 = vmatprep.subr.bf16.mxu1 %v2434_v0  ;;  %2020 = vmatprep.mubr.msk.bf16.mxu1 %vm2435_vm1, %v2434_v0  ;;  %65 = vst.msk [vmem:[#allocation2] sm:$0x1] %vm64_vm0, %v2436_v1  ;;  %v2516_v2 = vld [vmem:[#allocation8] sm:$0xff]   ;;  %v2519_v3 = vld [vmem:[#allocation8 + $0x8] sm:$0xff]   ;;  %vm103_vm2 = vcmask 261120   ;;  %vm66_vm3 = vcmask 254976   ;;  %v188_v29 = vlaneseq }
  0x39   :  { %2036 = vmatprep.subr.bf16.mxu0 %v2434_v0  ;;  %2040 = vmatprep.mubr.msk.bf16.mxu0 %vm2435_vm1, %v2434_v0  ;;  %67 = vst.msk [vmem:[#allocation3] sm:$0x3] %vm66_vm3, %v2434_v0  ;;  %68 = vst.msk [vmem:[#allocation4] sm:$0x3] %vm66_vm3, %v2434_v0  ;;  %v88_v5 = vld [vmem:[#allocation5] sm:$0x1] }
  0x3a   :  { %2017 = vmatpush3.bf16.msra.mxu1 %v2516_v2  ;;  %2037 = vmatpush3.bf16.msra.mxu0 %v2516_v2  ;;  %v89_v6 = vunpack.c.l.bf16 %v88_v5  ;;  %s2437_s2 = smov 32   ;;  %v2541_v24 = vld [vmem:[#allocation10] sm:$0xff]   ;;  %v2544_v25 = vld [vmem:[#allocation10 + $0x8] sm:$0xff]   ;;  %v2438_v27 = vmov 1966171168   ;;  %v2550_v30 = vld [vmem:[#allocation10 + $0x10] sm:$0xff]  }
  0x3b   :  { %2018 = vmatprep.subr.bf16.mxu1 %v2434_v0  ;;  %2038 = vmatprep.subr.bf16.mxu0 %v2434_v0  ;;  %v200_v28 = vunpack.c.l.s4 %v2438_v27  ;;  %v189_v32 = vshrl.u32 %v188_v29, 7  ;;  %v2554_v33 = vld [vmem:[#allocation10 + $0x18] sm:$0xff]   ;;  %vm216_vm4 = vcmask 253952   ;;  %vm243_vm5 = vcmask 523264   ;;  %v2575_v43 = vld [vmem:[%s2938_s3] ss:$0 sm:$0xff] }
  0x3c   :  { %v2439_v60 = vmov 1983009808   ;;  %s2440_s30 = smov 96   ;;  %vm340_vm6 = vcmask 516352  }
  0x3d   :  { %v201_v31 = vunpack.c.0.s8 %v200_v28  ;;  %v186_v61 = vunpack.c.l.s4 %v2439_v60 }
  0x3e   :  { %2019 = vmatpush3.bf16.msra.mxu1 %v2519_v3  ;;  %2039 = vmatpush3.bf16.msra.mxu0 %v2519_v3 }
  0x3f   :  { %v90_v4 = vld [vmem:[#allocation2] sm:$0x1]  ;;  %2024 = vmatprep.subr.bf16.mxu1 %v2434_v0  ;;  %2044 = vmatprep.subr.bf16.mxu0 %v2434_v0  ;;  %v2556_v35 = vsub.s32 %v201_v31, %v189_v32  ;;  %v187_v62 = vunpack.c.0.s8 %v186_v61 }
  0x40   :  { %v1910_v13 = vld.sshfl [vmem:[#allocation3] sm:$0x3 pattern:$0x76325410]  ;;  %v287_v40 = vld [vmem:[#allocation4] sm:$0x3] }
  0x41   :  { %2021 = vmatmul.mubr.msk.bf16.vlgmr.msra.gmra.mrb[0].mxu1 %vm103_vm2, %v90_v4  ;;  %v2580_v63 = vsub.s32 %v187_v62, %v189_v32 }
  0x42   :  { %2032 = vmatprep.mubr.msk.bf16.mxu1 %vm2435_vm1, %v2434_v0  ;;  %2025 = vmatpush3.bf16.msra.mxu1 %v2541_v24 }
  0x43   :  { %2026 = vmatprep.subr.bf16.mxu1 %v2434_v0 }
  0x46   :  { %2027 = vmatpush3.bf16.msra.mxu1 %v2544_v25 }
  0x47   :  { %2028 = vmatprep.subr.bf16.mxu1 %v2434_v0 }
  0x4a   :  { %2029 = vmatpush3.bf16.msra.mxu1 %v2550_v30 }
  0x4b   :  { %2030 = vmatprep.subr.bf16.mxu1 %v2434_v0 }
  0x4e   :  { %2031 = vmatpush3.bf16.msra.mxu1 %v2554_v33 }
  0x4f   :  { %2056 = vmatprep.subr.bf16.mxu1 %v2434_v0 }
 0x114   :  { %v141_v7 = vpop.f32.mrb[0].mxu1 }
 0x115   :  { %v147_v8 = vadd.f32 %v141_v7, %v89_v6  ;;  %v2022_v9 = vpop.f32.mrb[1].mxu1 }
 0x116   :  { %v144_v10 = vpop.f32.mrb[2].mxu1 }
 0x117   :  { %2198 = vtanh.f32 %v147_v8  ;;  %v2023_v11 = vpop.f32.mrb[3].mxu1  ;;  %v1909_v14 = vmul.f32 -1.442695, %v147_v8 }
 0x119   :  { %2200 = vpow2.f32 %v1909_v14  ;;  %v348_v14 = vld [vmem:[#allocation5 + $0x1] sm:$0x1] }
 0x121   :  { %v2199_v12 = vpop.eup %2198 }
 0x122   :  { %169 = vrot.lane.b32.xlu0 %v2199_v12, %s2437_s2 }
 0x123   :  { %v2201_v15 = vpop.eup %2200 }
 0x124   :  { %v152_v16 = vadd.f32 1.0, %v2201_v15  ;;  %v349_v15 = vunpack.c.l.bf16 %v348_v14 }
 0x126   :  { %164 = vrot.lane.b32.xlu0 %v1910_v13, %s2437_s2  ;;  %2202 = vrcp.f32 %v152_v16 }
 0x130   :  { %v2203_v17 = vpop.eup %2202 }
 0x194   :  { %v170_v18 = vpop.permute.xlu0 %169 }
 0x195   :  { %v172_v19 = vmul.f32 %v2203_v17, %v170_v18 }
 0x197   :  { %174 = vrot.lane.b32.xlu1 %v172_v19, %s2437_s2 }
 0x198   :  { %v165_v20 = vpop.permute.xlu0 %164 }
 0x199   :  { %v167_v21 = vmul.f32 %v2203_v17, %v165_v20 }
 0x209   :  { %v175_v22 = vpop.permute.xlu1 %174 }
 0x20a   :  { %v2538_v23 = vadd.f32 %v175_v22, %v167_v21 }
 0x20c   :  { %2204 = vtanh.f32 %v2538_v23  ;;  %v191_v4 = vrot.slane %v2538_v23, %v2580_v63 }
 0x216   :  { %v2205_v26 = vpop.eup %2204 }
 0x217   :  { %180 = vrot.lane.b32.xlu1 %v2205_v26, %s2437_s2 }
 0x289   :  { %v181_v34 = vpop.permute.xlu1 %180 }
 0x28a   :  { %v183_v36 = vmul.f32 %v2203_v17, %v181_v34 }
 0x28c   :  { %v197_v37 = vpack.c.bf16 %v183_v36, %v183_v36 }
 0x28e   :  { %v205_v38 = vrot.slane %v197_v37, %v2556_v35 }
 0x290   :  { %v212_v39 = vrot.slane %v205_v38, %v2556_v35 }
 0x292   :  { %213 = vrot.lane.b32.xlu0 %v212_v39, %s2428_s25 }
 0x296   :  { %296 = vrot.lane.b32.xlu0 %v287_v40, %s2437_s2 }
 0x304   :  { %v214_v41 = vpop.permute.xlu0 %213 }
 0x305   :  { %217 = vst.msk [vmem:[#allocation2] sm:$0x1] %vm216_vm4, %v214_v41 }
 0x308   :  { %v297_v56 = vpop.permute.xlu0 %296 }
 0x30c   :  { %v218_v42 = vld [vmem:[#allocation2] sm:$0x1] }
 0x30d   :  { %2033 = vmatmul.mubr.msk.bf16.vlgmr.msra.gmra.mrb[4].mxu1 %vm243_vm5, %v218_v42 }
 0x30e   :  { %2057 = vmatpush3.bf16.msra.mxu1 %v2516_v2  ;;  %2060 = vmatprep.mubr.msk.bf16.mxu1 %vm2435_vm1, %v2434_v0 }
 0x30f   :  { %2058 = vmatprep.subr.bf16.mxu1 %v2434_v0 }
 0x312   :  { %2059 = vmatpush3.bf16.msra.mxu1 %v2519_v3 }
 0x313   :  { %2064 = vmatprep.subr.bf16.mxu1 %v2434_v0 }
 0x3e0   :  { %v281_v44 = vpop.f32.mrb[4].mxu1 }
 0x3e1   :  { %v282_v45 = vadd.f32 %v2575_v43, %v281_v44  ;;  %v2034_v46 = vpop.f32.mrb[5].mxu1 }
 0x3e2   :  { %v284_v47 = vpop.f32.mrb[6].mxu1 }
 0x3e3   :  { %2206 = vtanh.f32 %v282_v45  ;;  %v2035_v48 = vpop.f32.mrb[7].mxu1  ;;  %v1916_v50 = vmul.f32 -1.442695, %v282_v45 }
 0x3e5   :  { %2208 = vpow2.f32 %v1916_v50 }
 0x3ed   :  { %v2207_v49 = vpop.eup %2206 }
 0x3ee   :  { %301 = vrot.lane.b32.xlu1 %v2207_v49, %s2437_s2 }
 0x3ef   :  { %v2209_v51 = vpop.eup %2208 }
 0x3f0   :  { %v291_v52 = vadd.f32 1.0, %v2209_v51 }
 0x3f2   :  { %2210 = vrcp.f32 %v291_v52 }
 0x3fc   :  { %v2211_v53 = vpop.eup %2210 }
 0x3fd   :  { %v299_v57 = vmul.f32 %v2211_v53, %v297_v56 }
 0x460   :  { %v302_v54 = vpop.permute.xlu1 %301 }
 0x461   :  { %v304_v55 = vmul.f32 %v2211_v53, %v302_v54 }
 0x463   :  { %306 = vrot.lane.b32.xlu1 %v304_v55, %s2437_s2 }
 0x4d5   :  { %v307_v58 = vpop.permute.xlu1 %306 }
 0x4d6   :  { %v309_v59 = vadd.f32 %v307_v58, %v299_v57 }
 0x4d8   :  { %2212 = vtanh.f32 %v309_v59 }
 0x4e2   :  { %v2213_v1 = vpop.eup %2212 }
 0x4e3   :  { %312 = vrot.lane.b32.xlu0 %v2213_v1, %s2437_s2 }
 0x4e7   :  { %192 = vrot.lane.b32.xlu0 %v191_v4, %s2440_s30 }
 0x555   :  { %v313_v5 = vpop.permute.xlu0 %312 }
 0x556   :  { %v2586_v6 = vmul.f32 %v2211_v53, %v313_v5 }
 0x558   :  { %v321_v7 = vpack.c.bf16 %v2586_v6, %v2586_v6 }
 0x559   :  { %v193_v8 = vpop.permute.xlu0 %192 }
 0x55a   :  { %v329_v9 = vrot.slane %v321_v7, %v2556_v35  ;;  %196 = vst.msk [vmem:[#allocation3] sm:$0x3] %vm66_vm3, %v193_v8 }
 0x55c   :  { %v336_v10 = vrot.slane %v329_v9, %v2556_v35 }
 0x55e   :  { %337 = vrot.lane.b32.xlu1 %v336_v10, %s2440_s30 }
 0x561   :  { %v1919_v11 = vld.sshfl [vmem:[#allocation3] sm:$0x3 pattern:$0x76325410] }
 0x562   :  { %411 = vrot.lane.b32.xlu0 %v1919_v11, %s2437_s2 }
 0x5d0   :  { %v338_v12 = vpop.permute.xlu1 %337 }
 0x5d1   :  { %341 = vst.msk [vmem:[#allocation2] sm:$0x1] %vm340_vm6, %v338_v12 }
 0x5d4   :  { %v412_v31 = vpop.permute.xlu0 %411 }
 0x5d8   :  { %v350_v13 = vld [vmem:[#allocation2] sm:$0x1] }
 0x5d9   :  { %2041 = vmatmul.mubr.msk.bf16.vlgmr.msra.gmra.mrb[0].mxu0 %vm103_vm2, %v350_v13 }
 0x5da   :  { %2045 = vmatpush3.bf16.msra.mxu0 %v2541_v24  ;;  %2052 = vmatprep.mubr.msk.bf16.mxu0 %vm2435_vm1, %v2434_v0 }
 0x5db   :  { %2046 = vmatprep.subr.bf16.mxu0 %v2434_v0 }
 0x5de   :  { %2047 = vmatpush3.bf16.msra.mxu0 %v2544_v25 }
 0x5df   :  { %2048 = vmatprep.subr.bf16.mxu0 %v2434_v0 }
 0x5e2   :  { %2049 = vmatpush3.bf16.msra.mxu0 %v2550_v30 }
 0x5e3   :  { %2050 = vmatprep.subr.bf16.mxu0 %v2434_v0 }
 0x5e6   :  { %2051 = vmatpush3.bf16.msra.mxu0 %v2554_v33 }
 0x5e7   :  { %2076 = vmatprep.subr.bf16.mxu0 %v2434_v0 }
 0x6ac   :  { %v388_v16 = vpop.f32.mrb[0].mxu0 }
 0x6ad   :  { %v394_v17 = vadd.f32 %v388_v16, %v349_v15  ;;  %v2042_v18 = vpop.f32.mrb[1].mxu0  ;;  %v568_v16 = vld [vmem:[#allocation5 + $0x2] sm:$0x1] }
 0x6ae   :  { %v391_v19 = vpop.f32.mrb[2].mxu0 }
 0x6af   :  { %2214 = vtanh.f32 %v394_v17  ;;  %v2043_v20 = vpop.f32.mrb[3].mxu0  ;;  %v1918_v22 = vmul.f32 -1.442695, %v394_v17  ;;  %v569_v17 = vunpack.c.l.bf16 %v568_v16 }
 0x6b1   :  { %2216 = vpow2.f32 %v1918_v22 }
 0x6b9   :  { %v2215_v21 = vpop.eup %2214 }
 0x6ba   :  { %416 = vrot.lane.b32.xlu1 %v2215_v21, %s2437_s2 }
 0x6bb   :  { %v2217_v23 = vpop.eup %2216 }
 0x6bc   :  { %v399_v26 = vadd.f32 1.0, %v2217_v23 }
 0x6be   :  { %2218 = vrcp.f32 %v399_v26 }
 0x6c8   :  { %v2219_v27 = vpop.eup %2218 }
 0x6c9   :  { %v414_v32 = vmul.f32 %v2219_v27, %v412_v31 }
 0x72c   :  { %v417_v28 = vpop.permute.xlu1 %416 }
 0x72d   :  { %v419_v29 = vmul.f32 %v2219_v27, %v417_v28 }
 0x72f   :  { %421 = vrot.lane.b32.xlu1 %v419_v29, %s2437_s2 }
 0x7a1   :  { %v422_v34 = vpop.permute.xlu1 %421 }
 0x7a2   :  { %v424_v36 = vadd.f32 %v422_v34, %v414_v32 }
 0x7a4   :  { %2220 = vtanh.f32 %v424_v36  ;;  %v438_v5 = vrot.slane %v424_v36, %v2580_v63 }
 0x7ae   :  { %v2221_v37 = vpop.eup %2220 }
 0x7af   :  { %427 = vrot.lane.b32.xlu0 %v2221_v37, %s2437_s2 }
 0x7b3   :  { %317 = vrot.lane.b32.xlu0 %v309_v59, %s2440_s30 }
 0x821   :  { %v428_v38 = vpop.permute.xlu0 %427 }
 0x822   :  { %v430_v39 = vmul.f32 %v2219_v27, %v428_v38 }
 0x824   :  { %v443_v40 = vpack.c.bf16 %v430_v39, %v430_v39 }
 0x825   :  { %v318_v41 = vpop.permute.xlu0 %317 }
 0x826   :  { %v451_v42 = vrot.slane %v443_v40, %v2556_v35  ;;  %320 = vst.msk [vmem:[#allocation4] sm:$0x3] %vm66_vm3, %v318_v41 }
 0x828   :  { %v458_v44 = vrot.slane %v451_v42, %v2556_v35 }
 0x82a   :  { %459 = vrot.lane.b32.xlu1 %v458_v44, %s2428_s25 }
 0x82d   :  { %v507_v45 = vld [vmem:[#allocation4] sm:$0x3] }
 0x82e   :  { %516 = vrot.lane.b32.xlu0 %v507_v45, %s2437_s2 }
 0x89c   :  { %v460_v46 = vpop.permute.xlu1 %459 }
 0x89d   :  { %462 = vst.msk [vmem:[#allocation2] sm:$0x1] %vm216_vm4, %v460_v46 }
 0x8a0   :  { %v517_v60 = vpop.permute.xlu0 %516 }
 0x8a4   :  { %v463_v47 = vld [vmem:[#allocation2] sm:$0x1] }
 0x8a5   :  { %2053 = vmatmul.mubr.msk.bf16.vlgmr.msra.gmra.mrb[4].mxu0 %vm243_vm5, %v463_v47 }
 0x8a6   :  { %2077 = vmatpush3.bf16.msra.mxu0 %v2516_v2  ;;  %2080 = vmatprep.mubr.msk.bf16.mxu0 %vm2435_vm1, %v2434_v0 }
 0x8a7   :  { %2078 = vmatprep.subr.bf16.mxu0 %v2434_v0 }
 0x8aa   :  { %2079 = vmatpush3.bf16.msra.mxu0 %v2519_v3 }
 0x8ab   :  { %2084 = vmatprep.subr.bf16.mxu0 %v2434_v0 }
 0x978   :  { %v501_v48 = vpop.f32.mrb[4].mxu0 }
 0x979   :  { %v502_v49 = vadd.f32 %v2575_v43, %v501_v48  ;;  %v2054_v50 = vpop.f32.mrb[5].mxu0 }
 0x97a   :  { %v504_v51 = vpop.f32.mrb[6].mxu0 }
 0x97b   :  { %2222 = vtanh.f32 %v502_v49  ;;  %v2055_v52 = vpop.f32.mrb[7].mxu0  ;;  %v1921_v54 = vmul.f32 -1.442695, %v502_v49 }
 0x97d   :  { %2224 = vpow2.f32 %v1921_v54 }
 0x985   :  { %v2223_v53 = vpop.eup %2222 }
 0x986   :  { %521 = vrot.lane.b32.xlu1 %v2223_v53, %s2437_s2 }
 0x987   :  { %v2225_v55 = vpop.eup %2224 }
 0x988   :  { %v511_v56 = vadd.f32 1.0, %v2225_v55 }
 0x98a   :  { %2226 = vrcp.f32 %v511_v56 }
 0x994   :  { %v2227_v57 = vpop.eup %2226 }
 0x995   :  { %v519_v61 = vmul.f32 %v2227_v57, %v517_v60 }
 0x9f8   :  { %v522_v58 = vpop.permute.xlu1 %521 }
 0x9f9   :  { %v524_v59 = vmul.f32 %v2227_v57, %v522_v58 }
 0x9fb   :  { %526 = vrot.lane.b32.xlu1 %v524_v59, %s2437_s2 }
 0xa6d   :  { %v527_v62 = vpop.permute.xlu1 %526 }
 0xa6e   :  { %v529_v1 = vadd.f32 %v527_v62, %v519_v61 }
 0xa70   :  { %2228 = vtanh.f32 %v529_v1 }
 0xa7a   :  { %v2229_v4 = vpop.eup %2228 }
 0xa7b   :  { %532 = vrot.lane.b32.xlu0 %v2229_v4, %s2437_s2 }
 0xa7f   :  { %439 = vrot.lane.b32.xlu0 %v438_v5, %s2440_s30 }
 0xaed   :  { %v533_v7 = vpop.permute.xlu0 %532 }
 0xaee   :  { %v2630_v8 = vmul.f32 %v2227_v57, %v533_v7 }
 0xaf0   :  { %v541_v9 = vpack.c.bf16 %v2630_v8, %v2630_v8 }
 0xaf1   :  { %v440_v10 = vpop.permute.xlu0 %439 }
 0xaf2   :  { %v549_v11 = vrot.slane %v541_v9, %v2556_v35  ;;  %442 = vst.msk [vmem:[#allocation3] sm:$0x3] %vm66_vm3, %v440_v10 }
 0xaf4   :  { %v556_v12 = vrot.slane %v549_v11, %v2556_v35 }
 0xaf6   :  { %557 = vrot.lane.b32.xlu1 %v556_v12, %s2440_s30 }
 0xaf9   :  { %v1924_v13 = vld.sshfl [vmem:[#allocation3] sm:$0x3 pattern:$0x76325410] }
 0xafa   :  { %631 = vrot.lane.b32.xlu0 %v1924_v13, %s2437_s2 }
 0xb68   :  { %v558_v14 = vpop.permute.xlu1 %557 }
 0xb69   :  { %560 = vst.msk [vmem:[#allocation2] sm:$0x1] %vm340_vm6, %v558_v14 }
 0xb6c   :  { %v632_v34 = vpop.permute.xlu0 %631 }
 0xb70   :  { %v570_v15 = vld [vmem:[#allocation2] sm:$0x1] }
 0xb71   :  { %2061 = vmatmul.mubr.msk.bf16.vlgmr.msra.gmra.mrb[8].mxu1 %vm103_vm2, %v570_v15 }
 0xb72   :  { %2065 = vmatpush3.bf16.msra.mxu1 %v2541_v24  ;;  %2072 = vmatprep.mubr.msk.bf16.mxu1 %vm2435_vm1, %v2434_v0 }
 0xb73   :  { %2066 = vmatprep.subr.bf16.mxu1 %v2434_v0 }
 0xb76   :  { %2067 = vmatpush3.bf16.msra.mxu1 %v2544_v25 }
 0xb77   :  { %2068 = vmatprep.subr.bf16.mxu1 %v2434_v0 }
 0xb7a   :  { %2069 = vmatpush3.bf16.msra.mxu1 %v2550_v30 }
 0xb7b   :  { %2070 = vmatprep.subr.bf16.mxu1 %v2434_v0 }
 0xb7e   :  { %2071 = vmatpush3.bf16.msra.mxu1 %v2554_v33 }
 0xb7f   :  { %2096 = vmatprep.subr.bf16.mxu1 %v2434_v0 }
 0xc44   :  { %v608_v18 = vpop.f32.mrb[8].mxu1 }
 0xc45   :  { %v614_v19 = vadd.f32 %v608_v18, %v569_v17  ;;  %v2062_v20 = vpop.f32.mrb[9].mxu1 }
 0xc46   :  { %v611_v21 = vpop.f32.mrb[10].mxu1 }
 0xc47   :  { %2230 = vtanh.f32 %v614_v19  ;;  %v2063_v22 = vpop.f32.mrb[11].mxu1  ;;  %v1923_v26 = vmul.f32 -1.442695, %v614_v19  ;;  %v788_v19 = vld [vmem:[#allocation5 + $0x3] sm:$0x1] }
 0xc48   :  { %v789_v20 = vunpack.c.l.bf16 %v788_v19 }
 0xc49   :  { %2232 = vpow2.f32 %v1923_v26 }
 0xc51   :  { %v2231_v23 = vpop.eup %2230 }
 0xc52   :  { %636 = vrot.lane.b32.xlu1 %v2231_v23, %s2437_s2 }
 0xc53   :  { %v2233_v27 = vpop.eup %2232 }
 0xc54   :  { %v619_v28 = vadd.f32 1.0, %v2233_v27 }
 0xc56   :  { %2234 = vrcp.f32 %v619_v28 }
 0xc60   :  { %v2235_v29 = vpop.eup %2234 }
 0xc61   :  { %v634_v36 = vmul.f32 %v2235_v29, %v632_v34 }
 0xcc4   :  { %v637_v31 = vpop.permute.xlu1 %636 }
 0xcc5   :  { %v639_v32 = vmul.f32 %v2235_v29, %v637_v31 }
 0xcc7   :  { %641 = vrot.lane.b32.xlu1 %v639_v32, %s2437_s2 }
 0xd39   :  { %v642_v37 = vpop.permute.xlu1 %641 }
 0xd3a   :  { %v644_v38 = vadd.f32 %v642_v37, %v634_v36 }
 0xd3c   :  { %2236 = vtanh.f32 %v644_v38  ;;  %v658_v9 = vrot.slane %v644_v38, %v2580_v63 }
 0xd46   :  { %v2237_v39 = vpop.eup %2236 }
 0xd47   :  { %647 = vrot.lane.b32.xlu0 %v2237_v39, %s2437_s2 }
 0xd4b   :  { %537 = vrot.lane.b32.xlu0 %v529_v1, %s2440_s30 }
 0xdb9   :  { %v648_v40 = vpop.permute.xlu0 %647 }
 0xdba   :  { %v650_v41 = vmul.f32 %v2235_v29, %v648_v40 }
 0xdbc   :  { %v663_v42 = vpack.c.bf16 %v650_v41, %v650_v41 }
 0xdbd   :  { %v538_v44 = vpop.permute.xlu0 %537 }
 0xdbe   :  { %v671_v45 = vrot.slane %v663_v42, %v2556_v35  ;;  %540 = vst.msk [vmem:[#allocation4] sm:$0x3] %vm66_vm3, %v538_v44 }
 0xdc0   :  { %v678_v46 = vrot.slane %v671_v45, %v2556_v35 }
 0xdc2   :  { %679 = vrot.lane.b32.xlu1 %v678_v46, %s2428_s25 }
 0xdc5   :  { %v727_v47 = vld [vmem:[#allocation4] sm:$0x3] }
 0xdc6   :  { %736 = vrot.lane.b32.xlu0 %v727_v47, %s2437_s2 }
 0xe34   :  { %v680_v48 = vpop.permute.xlu1 %679 }
 0xe35   :  { %682 = vst.msk [vmem:[#allocation2] sm:$0x1] %vm216_vm4, %v680_v48 }
 0xe38   :  { %v737_v62 = vpop.permute.xlu0 %736 }
 0xe3c   :  { %v683_v49 = vld [vmem:[#allocation2] sm:$0x1] }
 0xe3d   :  { %2073 = vmatmul.mubr.msk.bf16.vlgmr.msra.gmra.mrb[12].mxu1 %vm243_vm5, %v683_v49 }
 0xe3e   :  { %2097 = vmatpush3.bf16.msra.mxu1 %v2516_v2  ;;  %2100 = vmatprep.mubr.msk.bf16.mxu1 %vm2435_vm1, %v2434_v0 }
 0xe3f   :  { %2098 = vmatprep.subr.bf16.mxu1 %v2434_v0 }
 0xe42   :  { %2099 = vmatpush3.bf16.msra.mxu1 %v2519_v3 }
 0xe43   :  { %2104 = vmatprep.subr.bf16.mxu1 %v2434_v0 }
 0xf10   :  { %v721_v50 = vpop.f32.mrb[12].mxu1 }
 0xf11   :  { %v722_v51 = vadd.f32 %v2575_v43, %v721_v50  ;;  %v2074_v52 = vpop.f32.mrb[13].mxu1 }
 0xf12   :  { %v724_v53 = vpop.f32.mrb[14].mxu1 }
 0xf13   :  { %2238 = vtanh.f32 %v722_v51  ;;  %v2075_v54 = vpop.f32.mrb[15].mxu1  ;;  %v1926_v56 = vmul.f32 -1.442695, %v722_v51 }
 0xf15   :  { %2240 = vpow2.f32 %v1926_v56 }
 0xf1d   :  { %v2239_v55 = vpop.eup %2238 }
 0xf1e   :  { %741 = vrot.lane.b32.xlu1 %v2239_v55, %s2437_s2 }
 0xf1f   :  { %v2241_v57 = vpop.eup %2240 }
 0xf20   :  { %v731_v58 = vadd.f32 1.0, %v2241_v57 }
 0xf22   :  { %2242 = vrcp.f32 %v731_v58 }
 0xf2c   :  { %v2243_v59 = vpop.eup %2242 }
 0xf2d   :  { %v739_v1 = vmul.f32 %v2243_v59, %v737_v62 }
 0xf90   :  { %v742_v60 = vpop.permute.xlu1 %741 }
 0xf91   :  { %v744_v61 = vmul.f32 %v2243_v59, %v742_v60 }
 0xf93   :  { %746 = vrot.lane.b32.xlu1 %v744_v61, %s2437_s2 }
0x1005   :  { %v747_v4 = vpop.permute.xlu1 %746 }
0x1006   :  { %v749_v5 = vadd.f32 %v747_v4, %v739_v1 }
0x1008   :  { %2244 = vtanh.f32 %v749_v5 }
0x1012   :  { %v2245_v7 = vpop.eup %2244 }
0x1013   :  { %752 = vrot.lane.b32.xlu0 %v2245_v7, %s2437_s2 }
0x1017   :  { %659 = vrot.lane.b32.xlu0 %v658_v9, %s2440_s30 }
0x1085   :  { %v753_v10 = vpop.permute.xlu0 %752 }
0x1086   :  { %v2674_v11 = vmul.f32 %v2243_v59, %v753_v10 }
0x1088   :  { %v761_v12 = vpack.c.bf16 %v2674_v11, %v2674_v11 }
0x1089   :  { %v660_v13 = vpop.permute.xlu0 %659 }
0x108a   :  { %v769_v14 = vrot.slane %v761_v12, %v2556_v35  ;;  %662 = vst.msk [vmem:[#allocation3] sm:$0x3] %vm66_vm3, %v660_v13 }
0x108c   :  { %v776_v15 = vrot.slane %v769_v14, %v2556_v35 }
0x108e   :  { %777 = vrot.lane.b32.xlu1 %v776_v15, %s2440_s30 }
0x1091   :  { %v1929_v16 = vld.sshfl [vmem:[#allocation3] sm:$0x3 pattern:$0x76325410] }
0x1092   :  { %851 = vrot.lane.b32.xlu0 %v1929_v16, %s2437_s2 }
0x1100   :  { %v778_v17 = vpop.permute.xlu1 %777 }
0x1101   :  { %780 = vst.msk [vmem:[#allocation2] sm:$0x1] %vm340_vm6, %v778_v17 }
0x1104   :  { %v852_v38 = vpop.permute.xlu0 %851 }
0x1108   :  { %v790_v18 = vld [vmem:[#allocation2] sm:$0x1] }
0x1109   :  { %2081 = vmatmul.mubr.msk.bf16.vlgmr.msra.gmra.mrb[8].mxu0 %vm103_vm2, %v790_v18 }
0x110a   :  { %2085 = vmatpush3.bf16.msra.mxu0 %v2541_v24  ;;  %2092 = vmatprep.mubr.msk.bf16.mxu0 %vm2435_vm1, %v2434_v0 }
0x110b   :  { %2086 = vmatprep.subr.bf16.mxu0 %v2434_v0 }
0x110e   :  { %2087 = vmatpush3.bf16.msra.mxu0 %v2544_v25 }
0x110f   :  { %2088 = vmatprep.subr.bf16.mxu0 %v2434_v0 }
0x1112   :  { %2089 = vmatpush3.bf16.msra.mxu0 %v2550_v30 }
0x1113   :  { %2090 = vmatprep.subr.bf16.mxu0 %v2434_v0 }
0x1116   :  { %2091 = vmatpush3.bf16.msra.mxu0 %v2554_v33 }
0x1117   :  { %2116 = vmatprep.subr.bf16.mxu0 %v2434_v0 }
0x11dc   :  { %v828_v21 = vpop.f32.mrb[8].mxu0 }
0x11dd   :  { %v834_v22 = vadd.f32 %v828_v21, %v789_v20  ;;  %v2082_v23 = vpop.f32.mrb[9].mxu0 }
0x11de   :  { %v831_v26 = vpop.f32.mrb[10].mxu0  ;;  %v1008_v23 = vld [vmem:[#allocation5 + $0x4] sm:$0x1] }
0x11df   :  { %2246 = vtanh.f32 %v834_v22  ;;  %v2083_v27 = vpop.f32.mrb[11].mxu0  ;;  %v1928_v29 = vmul.f32 -1.442695, %v834_v22  ;;  %v1009_v26 = vunpack.c.l.bf16 %v1008_v23 }
0x11e1   :  { %2248 = vpow2.f32 %v1928_v29 }
0x11e9   :  { %v2247_v28 = vpop.eup %2246 }
0x11ea   :  { %856 = vrot.lane.b32.xlu1 %v2247_v28, %s2437_s2 }
0x11eb   :  { %v2249_v31 = vpop.eup %2248 }
0x11ec   :  { %v839_v32 = vadd.f32 1.0, %v2249_v31 }
0x11ee   :  { %2250 = vrcp.f32 %v839_v32 }
0x11f8   :  { %v2251_v34 = vpop.eup %2250 }
0x11f9   :  { %v854_v39 = vmul.f32 %v2251_v34, %v852_v38 }
0x125c   :  { %v857_v36 = vpop.permute.xlu1 %856 }
0x125d   :  { %v859_v37 = vmul.f32 %v2251_v34, %v857_v36 }
0x125f   :  { %861 = vrot.lane.b32.xlu1 %v859_v37, %s2437_s2 }
0x12d1   :  { %v862_v40 = vpop.permute.xlu1 %861 }
0x12d2   :  { %v864_v41 = vadd.f32 %v862_v40, %v854_v39 }
0x12d4   :  { %2252 = vtanh.f32 %v864_v41  ;;  %v878_v13 = vrot.slane %v864_v41, %v2580_v63 }
0x12de   :  { %v2253_v42 = vpop.eup %2252 }
0x12df   :  { %867 = vrot.lane.b32.xlu0 %v2253_v42, %s2437_s2 }
0x12e3   :  { %757 = vrot.lane.b32.xlu0 %v749_v5, %s2440_s30 }
0x1351   :  { %v868_v44 = vpop.permute.xlu0 %867 }
0x1352   :  { %v870_v45 = vmul.f32 %v2251_v34, %v868_v44 }
0x1354   :  { %v883_v46 = vpack.c.bf16 %v870_v45, %v870_v45 }
0x1355   :  { %v758_v47 = vpop.permute.xlu0 %757 }
0x1356   :  { %v891_v48 = vrot.slane %v883_v46, %v2556_v35  ;;  %760 = vst.msk [vmem:[#allocation4] sm:$0x3] %vm66_vm3, %v758_v47 }
0x1358   :  { %v898_v49 = vrot.slane %v891_v48, %v2556_v35 }
0x135a   :  { %899 = vrot.lane.b32.xlu1 %v898_v49, %s2428_s25 }
0x135d   :  { %v947_v50 = vld [vmem:[#allocation4] sm:$0x3] }
0x135e   :  { %956 = vrot.lane.b32.xlu0 %v947_v50, %s2437_s2 }
0x13cc   :  { %v900_v51 = vpop.permute.xlu1 %899 }
0x13cd   :  { %902 = vst.msk [vmem:[#allocation2] sm:$0x1] %vm216_vm4, %v900_v51 }
0x13d0   :  { %v957_v5 = vpop.permute.xlu0 %956 }
0x13d4   :  { %v903_v52 = vld [vmem:[#allocation2] sm:$0x1] }
0x13d5   :  { %2093 = vmatmul.mubr.msk.bf16.vlgmr.msra.gmra.mrb[12].mxu0 %vm243_vm5, %v903_v52 }
0x13d6   :  { %2117 = vmatpush3.bf16.msra.mxu0 %v2516_v2  ;;  %2120 = vmatprep.mubr.msk.bf16.mxu0 %vm2435_vm1, %v2434_v0 }
0x13d7   :  { %2118 = vmatprep.subr.bf16.mxu0 %v2434_v0 }
0x13da   :  { %2119 = vmatpush3.bf16.msra.mxu0 %v2519_v3 }
0x13db   :  { %2124 = vmatprep.subr.bf16.mxu0 %v2434_v0 }
0x14a8   :  { %v941_v53 = vpop.f32.mrb[12].mxu0 }
0x14a9   :  { %v942_v54 = vadd.f32 %v2575_v43, %v941_v53  ;;  %v2094_v55 = vpop.f32.mrb[13].mxu0 }
0x14aa   :  { %v944_v56 = vpop.f32.mrb[14].mxu0 }
0x14ab   :  { %2254 = vtanh.f32 %v942_v54  ;;  %v2095_v57 = vpop.f32.mrb[15].mxu0  ;;  %v1931_v59 = vmul.f32 -1.442695, %v942_v54 }
0x14ad   :  { %2256 = vpow2.f32 %v1931_v59 }
0x14b5   :  { %v2255_v58 = vpop.eup %2254 }
0x14b6   :  { %961 = vrot.lane.b32.xlu1 %v2255_v58, %s2437_s2 }
0x14b7   :  { %v2257_v60 = vpop.eup %2256 }
0x14b8   :  { %v951_v61 = vadd.f32 1.0, %v2257_v60 }
0x14ba   :  { %2258 = vrcp.f32 %v951_v61 }
0x14c4   :  { %v2259_v62 = vpop.eup %2258 }
0x14c5   :  { %v959_v7 = vmul.f32 %v2259_v62, %v957_v5 }
0x1528   :  { %v962_v1 = vpop.permute.xlu1 %961 }
0x1529   :  { %v964_v4 = vmul.f32 %v2259_v62, %v962_v1 }
0x152b   :  { %966 = vrot.lane.b32.xlu1 %v964_v4, %s2437_s2 }
0x159d   :  { %v967_v9 = vpop.permute.xlu1 %966 }
0x159e   :  { %v969_v10 = vadd.f32 %v967_v9, %v959_v7 }
0x15a0   :  { %2260 = vtanh.f32 %v969_v10 }
0x15aa   :  { %v2261_v12 = vpop.eup %2260 }
0x15ab   :  { %972 = vrot.lane.b32.xlu0 %v2261_v12, %s2437_s2 }
0x15af   :  { %879 = vrot.lane.b32.xlu0 %v878_v13, %s2440_s30 }
0x161d   :  { %v973_v14 = vpop.permute.xlu0 %972 }
0x161e   :  { %v2718_v15 = vmul.f32 %v2259_v62, %v973_v14 }
0x1620   :  { %v981_v16 = vpack.c.bf16 %v2718_v15, %v2718_v15 }
0x1621   :  { %v880_v17 = vpop.permute.xlu0 %879 }
0x1622   :  { %v989_v18 = vrot.slane %v981_v16, %v2556_v35  ;;  %882 = vst.msk [vmem:[#allocation3] sm:$0x3] %vm66_vm3, %v880_v17 }
0x1624   :  { %v996_v19 = vrot.slane %v989_v18, %v2556_v35 }
0x1626   :  { %997 = vrot.lane.b32.xlu1 %v996_v19, %s2440_s30 }
0x1629   :  { %v1934_v20 = vld.sshfl [vmem:[#allocation3] sm:$0x3 pattern:$0x76325410] }
0x162a   :  { %1071 = vrot.lane.b32.xlu0 %v1934_v20, %s2437_s2 }
0x1698   :  { %v998_v21 = vpop.permute.xlu1 %997 }
0x1699   :  { %1000 = vst.msk [vmem:[#allocation2] sm:$0x1] %vm340_vm6, %v998_v21 }
0x169c   :  { %v1072_v42 = vpop.permute.xlu0 %1071 }
0x16a0   :  { %v1010_v22 = vld [vmem:[#allocation2] sm:$0x1] }
0x16a1   :  { %2101 = vmatmul.mubr.msk.bf16.vlgmr.msra.gmra.mrb[16].mxu1 %vm103_vm2, %v1010_v22 }
0x16a2   :  { %2105 = vmatpush3.bf16.msra.mxu1 %v2541_v24  ;;  %2112 = vmatprep.mubr.msk.bf16.mxu1 %vm2435_vm1, %v2434_v0 }
0x16a3   :  { %2106 = vmatprep.subr.bf16.mxu1 %v2434_v0 }
0x16a6   :  { %2107 = vmatpush3.bf16.msra.mxu1 %v2544_v25 }
0x16a7   :  { %2108 = vmatprep.subr.bf16.mxu1 %v2434_v0 }
0x16aa   :  { %2109 = vmatpush3.bf16.msra.mxu1 %v2550_v30 }
0x16ab   :  { %2110 = vmatprep.subr.bf16.mxu1 %v2434_v0 }
0x16ae   :  { %2111 = vmatpush3.bf16.msra.mxu1 %v2554_v33 }
0x16af   :  { %2136 = vmatprep.subr.bf16.mxu1 %v2434_v0 }
0x1774   :  { %v1048_v27 = vpop.f32.mrb[16].mxu1 }
0x1775   :  { %v1054_v28 = vadd.f32 %v1048_v27, %v1009_v26  ;;  %v2102_v29 = vpop.f32.mrb[17].mxu1 }
0x1776   :  { %v1051_v31 = vpop.f32.mrb[18].mxu1 }
0x1777   :  { %2262 = vtanh.f32 %v1054_v28  ;;  %v2103_v32 = vpop.f32.mrb[19].mxu1  ;;  %v1933_v36 = vmul.f32 -1.442695, %v1054_v28  ;;  %v1228_v28 = vld [vmem:[#allocation5 + $0x5] sm:$0x1] }
0x1778   :  { %v1229_v29 = vunpack.c.l.bf16 %v1228_v28 }
0x1779   :  { %2264 = vpow2.f32 %v1933_v36 }
0x1781   :  { %v2263_v34 = vpop.eup %2262 }
0x1782   :  { %1076 = vrot.lane.b32.xlu1 %v2263_v34, %s2437_s2 }
0x1783   :  { %v2265_v37 = vpop.eup %2264 }
0x1784   :  { %v1059_v38 = vadd.f32 1.0, %v2265_v37 }
0x1786   :  { %2266 = vrcp.f32 %v1059_v38 }
0x1790   :  { %v2267_v39 = vpop.eup %2266 }
0x1791   :  { %v1074_v44 = vmul.f32 %v2267_v39, %v1072_v42 }
0x17f4   :  { %v1077_v40 = vpop.permute.xlu1 %1076 }
0x17f5   :  { %v1079_v41 = vmul.f32 %v2267_v39, %v1077_v40 }
0x17f7   :  { %1081 = vrot.lane.b32.xlu1 %v1079_v41, %s2437_s2 }
0x1869   :  { %v1082_v45 = vpop.permute.xlu1 %1081 }
0x186a   :  { %v1084_v46 = vadd.f32 %v1082_v45, %v1074_v44 }
0x186c   :  { %2268 = vtanh.f32 %v1084_v46  ;;  %v1098_v16 = vrot.slane %v1084_v46, %v2580_v63 }
0x1876   :  { %v2269_v47 = vpop.eup %2268 }
0x1877   :  { %1087 = vrot.lane.b32.xlu0 %v2269_v47, %s2437_s2 }
0x187b   :  { %977 = vrot.lane.b32.xlu0 %v969_v10, %s2440_s30 }
0x18e9   :  { %v1088_v48 = vpop.permute.xlu0 %1087 }
0x18ea   :  { %v1090_v49 = vmul.f32 %v2267_v39, %v1088_v48 }
0x18ec   :  { %v1103_v50 = vpack.c.bf16 %v1090_v49, %v1090_v49 }
0x18ed   :  { %v978_v51 = vpop.permute.xlu0 %977 }
0x18ee   :  { %v1111_v52 = vrot.slane %v1103_v50, %v2556_v35  ;;  %980 = vst.msk [vmem:[#allocation4] sm:$0x3] %vm66_vm3, %v978_v51 }
0x18f0   :  { %v1118_v53 = vrot.slane %v1111_v52, %v2556_v35 }
0x18f2   :  { %1119 = vrot.lane.b32.xlu1 %v1118_v53, %s2428_s25 }
0x18f5   :  { %v1167_v54 = vld [vmem:[#allocation4] sm:$0x3] }
0x18f6   :  { %1176 = vrot.lane.b32.xlu0 %v1167_v54, %s2437_s2 }
0x1964   :  { %v1120_v55 = vpop.permute.xlu1 %1119 }
0x1965   :  { %1122 = vst.msk [vmem:[#allocation2] sm:$0x1] %vm216_vm4, %v1120_v55 }
0x1968   :  { %v1177_v9 = vpop.permute.xlu0 %1176 }
0x196c   :  { %v1123_v56 = vld [vmem:[#allocation2] sm:$0x1] }
0x196d   :  { %2113 = vmatmul.mubr.msk.bf16.vlgmr.msra.gmra.mrb[20].mxu1 %vm243_vm5, %v1123_v56  ;;  %v2326_v56 = vld [vmem:[#allocation8] sm:$0xff]  }
0x196e   :  { %2137 = vmatpush3.bf16.msra.mxu1 %v2516_v2  ;;  %2140 = vmatprep.mubr.msk.bf16.mxu1 %vm2435_vm1, %v2434_v0 }
0x196f   :  { %2138 = vmatprep.subr.bf16.mxu1 %v2434_v0 }
0x1972   :  { %2139 = vmatpush3.bf16.msra.mxu1 %v2519_v3 }
0x1973   :  { %2144 = vmatprep.subr.bf16.mxu1 %v2434_v0 }
0x1a40   :  { %v1161_v57 = vpop.f32.mrb[20].mxu1 }
0x1a41   :  { %v1162_v58 = vadd.f32 %v2575_v43, %v1161_v57  ;;  %v2114_v59 = vpop.f32.mrb[21].mxu1  ;;  %v2327_v57 = vld [vmem:[#allocation8 + $0x8] sm:$0xff]  }
0x1a42   :  { %v1164_v60 = vpop.f32.mrb[22].mxu1 }
0x1a43   :  { %2270 = vtanh.f32 %v1162_v58  ;;  %v2115_v61 = vpop.f32.mrb[23].mxu1  ;;  %v1936_v2 = vmul.f32 -1.442695, %v1162_v58 }
0x1a45   :  { %2272 = vpow2.f32 %v1936_v2 }
0x1a4d   :  { %v2271_v62 = vpop.eup %2270 }
0x1a4e   :  { %1181 = vrot.lane.b32.xlu1 %v2271_v62, %s2437_s2 }
0x1a4f   :  { %v2273_v1 = vpop.eup %2272 }
0x1a50   :  { %v1171_v4 = vadd.f32 1.0, %v2273_v1 }
0x1a52   :  { %2274 = vrcp.f32 %v1171_v4 }
0x1a5c   :  { %v2275_v5 = vpop.eup %2274 }
0x1a5d   :  { %v1179_v10 = vmul.f32 %v2275_v5, %v1177_v9 }
0x1ac0   :  { %v1182_v7 = vpop.permute.xlu1 %1181 }
0x1ac1   :  { %v1184_v3 = vmul.f32 %v2275_v5, %v1182_v7 }
0x1ac3   :  { %1186 = vrot.lane.b32.xlu1 %v1184_v3, %s2437_s2 }
0x1b35   :  { %v1187_v12 = vpop.permute.xlu1 %1186 }
0x1b36   :  { %v1189_v13 = vadd.f32 %v1187_v12, %v1179_v10 }
0x1b38   :  { %2276 = vtanh.f32 %v1189_v13 }
0x1b42   :  { %v2277_v14 = vpop.eup %2276 }
0x1b43   :  { %1192 = vrot.lane.b32.xlu0 %v2277_v14, %s2437_s2 }
0x1b47   :  { %1099 = vrot.lane.b32.xlu0 %v1098_v16, %s2440_s30 }
0x1bb5   :  { %v1193_v17 = vpop.permute.xlu0 %1192 }
0x1bb6   :  { %v2762_v18 = vmul.f32 %v2275_v5, %v1193_v17 }
0x1bb8   :  { %v1201_v19 = vpack.c.bf16 %v2762_v18, %v2762_v18 }
0x1bb9   :  { %v1100_v20 = vpop.permute.xlu0 %1099 }
0x1bba   :  { %v1209_v21 = vrot.slane %v1201_v19, %v2556_v35  ;;  %1102 = vst.msk [vmem:[#allocation3] sm:$0x3] %vm66_vm3, %v1100_v20 }
0x1bbc   :  { %v1216_v22 = vrot.slane %v1209_v21, %v2556_v35 }
0x1bbe   :  { %1217 = vrot.lane.b32.xlu1 %v1216_v22, %s2440_s30 }
0x1bc1   :  { %v1939_v23 = vld.sshfl [vmem:[#allocation3] sm:$0x3 pattern:$0x76325410] }
0x1bc2   :  { %1291 = vrot.lane.b32.xlu0 %v1939_v23, %s2437_s2 }
0x1c30   :  { %v1218_v26 = vpop.permute.xlu1 %1217 }
0x1c31   :  { %1220 = vst.msk [vmem:[#allocation2] sm:$0x1] %vm340_vm6, %v1218_v26 }
0x1c34   :  { %v1292_v41 = vpop.permute.xlu0 %1291 }
0x1c38   :  { %v1230_v27 = vld [vmem:[#allocation2] sm:$0x1] }
0x1c39   :  { %2121 = vmatmul.mubr.msk.bf16.vlgmr.msra.gmra.mrb[16].mxu0 %vm103_vm2, %v1230_v27 }
0x1c3a   :  { %2125 = vmatpush3.bf16.msra.mxu0 %v2541_v24  ;;  %2132 = vmatprep.mubr.msk.bf16.mxu0 %vm2435_vm1, %v2434_v0 }
0x1c3b   :  { %2126 = vmatprep.subr.bf16.mxu0 %v2434_v0 }
0x1c3e   :  { %2127 = vmatpush3.bf16.msra.mxu0 %v2544_v25 }
0x1c3f   :  { %2128 = vmatprep.subr.bf16.mxu0 %v2434_v0 }
0x1c42   :  { %2129 = vmatpush3.bf16.msra.mxu0 %v2550_v30 }
0x1c43   :  { %2130 = vmatprep.subr.bf16.mxu0 %v2434_v0 }
0x1c46   :  { %2131 = vmatpush3.bf16.msra.mxu0 %v2554_v33 }
0x1c47   :  { %2156 = vmatprep.subr.bf16.mxu0 %v2434_v0 }
0x1d0c   :  { %v1268_v24 = vpop.f32.mrb[16].mxu0 }
0x1d0d   :  { %v1274_v31 = vadd.f32 %v1268_v24, %v1229_v29  ;;  %v2122_v32 = vpop.f32.mrb[17].mxu0  ;;  %v2815_v29 = vld [vmem:[#allocation10] sm:$0xff]   ;;  %v2821_v24 = vld [vmem:[#allocation10 + $0x8] sm:$0xff]  }
0x1d0e   :  { %v1271_v34 = vpop.f32.mrb[18].mxu0  ;;  %v2829_v32 = vld [vmem:[#allocation10 + $0x18] sm:$0xff]  }
0x1d0f   :  { %2278 = vtanh.f32 %v1274_v31  ;;  %v2123_v36 = vpop.f32.mrb[19].mxu0  ;;  %v1938_v25 = vmul.f32 -1.442695, %v1274_v31  ;;  %v2825_v31 = vld [vmem:[#allocation10 + $0x10] sm:$0xff]   ;;  %v1448_v34 = vld [vmem:[#allocation5 + $0x6] sm:$0x1] }
0x1d10   :  { %v1449_v36 = vunpack.c.l.bf16 %v1448_v34 }
0x1d11   :  { %2280 = vpow2.f32 %v1938_v25 }
0x1d19   :  { %v2279_v37 = vpop.eup %2278 }
0x1d1a   :  { %1296 = vrot.lane.b32.xlu1 %v2279_v37, %s2437_s2 }
0x1d1b   :  { %v2281_v30 = vpop.eup %2280 }
0x1d1c   :  { %v1279_v38 = vadd.f32 1.0, %v2281_v30 }
0x1d1e   :  { %2282 = vrcp.f32 %v1279_v38 }
0x1d28   :  { %v2283_v39 = vpop.eup %2282 }
0x1d29   :  { %v1294_v42 = vmul.f32 %v2283_v39, %v1292_v41 }
0x1d8c   :  { %v1297_v33 = vpop.permute.xlu1 %1296 }
0x1d8d   :  { %v1299_v40 = vmul.f32 %v2283_v39, %v1297_v33 }
0x1d8f   :  { %1301 = vrot.lane.b32.xlu1 %v1299_v40, %s2437_s2 }
0x1e01   :  { %v1302_v44 = vpop.permute.xlu1 %1301 }
0x1e02   :  { %v1304_v45 = vadd.f32 %v1302_v44, %v1294_v42 }
0x1e04   :  { %2284 = vtanh.f32 %v1304_v45  ;;  %v1318_v16 = vrot.slane %v1304_v45, %v2580_v63 }
0x1e0e   :  { %v2285_v46 = vpop.eup %2284 }
0x1e0f   :  { %1307 = vrot.lane.b32.xlu0 %v2285_v46, %s2437_s2 }
0x1e13   :  { %1197 = vrot.lane.b32.xlu0 %v1189_v13, %s2440_s30 }
0x1e81   :  { %v1308_v47 = vpop.permute.xlu0 %1307 }
0x1e82   :  { %v1310_v48 = vmul.f32 %v2283_v39, %v1308_v47 }
0x1e84   :  { %v1323_v49 = vpack.c.bf16 %v1310_v48, %v1310_v48 }
0x1e85   :  { %v1198_v50 = vpop.permute.xlu0 %1197 }
0x1e86   :  { %v1331_v51 = vrot.slane %v1323_v49, %v2556_v35  ;;  %1200 = vst.msk [vmem:[#allocation4] sm:$0x3] %vm66_vm3, %v1198_v50 }
0x1e88   :  { %v1338_v52 = vrot.slane %v1331_v51, %v2556_v35 }
0x1e8a   :  { %1339 = vrot.lane.b32.xlu1 %v1338_v52, %s2428_s25 }
0x1e8d   :  { %v1387_v53 = vld [vmem:[#allocation4] sm:$0x3] }
0x1e8e   :  { %1396 = vrot.lane.b32.xlu0 %v1387_v53, %s2437_s2 }
0x1efc   :  { %v1340_v54 = vpop.permute.xlu1 %1339 }
0x1efd   :  { %1342 = vst.msk [vmem:[#allocation2] sm:$0x1] %vm216_vm4, %v1340_v54 }
0x1f00   :  { %v1397_v10 = vpop.permute.xlu0 %1396 }
0x1f04   :  { %v1343_v55 = vld [vmem:[#allocation2] sm:$0x1] }
0x1f05   :  { %2133 = vmatmul.mubr.msk.bf16.vlgmr.msra.gmra.mrb[20].mxu0 %vm243_vm5, %v1343_v55 }
0x1f06   :  { %2157 = vmatpush3.bf16.msra.mxu0 %v2326_v56  ;;  %2160 = vmatprep.mubr.msk.bf16.mxu0 %vm2435_vm1, %v2434_v0 }
0x1f07   :  { %2158 = vmatprep.subr.bf16.mxu0 %v2434_v0 }
0x1f0a   :  { %2159 = vmatpush3.bf16.msra.mxu0 %v2327_v57 }
0x1f0b   :  { %2164 = vmatprep.subr.bf16.mxu0 %v2434_v0 }
0x1fd8   :  { %v1381_v58 = vpop.f32.mrb[20].mxu0 }
0x1fd9   :  { %v1382_v59 = vadd.f32 %v2575_v43, %v1381_v58  ;;  %v2134_v60 = vpop.f32.mrb[21].mxu0 }
0x1fda   :  { %v1384_v61 = vpop.f32.mrb[22].mxu0 }
0x1fdb   :  { %2286 = vtanh.f32 %v1382_v59  ;;  %v2135_v62 = vpop.f32.mrb[23].mxu0  ;;  %v1941_v1 = vmul.f32 -1.442695, %v1382_v59 }
0x1fdc   :  { %v2846_v62 = vld [vmem:[%s2938_s3] ss:$0 sm:$0xff]  ;;  %s2441_s3 = smov [#allocation11]  }
0x1fdd   :  { %2288 = vpow2.f32 %v1941_v1  ;;  %s1892_s7 = sshll.u32 %s2441_s3, 4  ;;  %s1893_s7 = int_to_ptr.vmem [resolvable:$true] %s1892_s7 }
0x1fde   :  { %p2404_p11 = scmp.lt.s32.totalorder %s1893_s7, %s1893_s7 }
0x1fe5   :  { %v2287_v2 = vpop.eup %2286 }
0x1fe6   :  { %1401 = vrot.lane.b32.xlu1 %v2287_v2, %s2437_s2 }
0x1fe7   :  { %v2289_v4 = vpop.eup %2288 }
0x1fe8   :  { %v1391_v5 = vadd.f32 1.0, %v2289_v4 }
0x1fea   :  { %2290 = vrcp.f32 %v1391_v5 }
0x1ff4   :  { %v2291_v7 = vpop.eup %2290 }
0x1ff5   :  { %v1399_v12 = vmul.f32 %v2291_v7, %v1397_v10 }
0x2058   :  { %v1402_v3 = vpop.permute.xlu1 %1401 }
0x2059   :  { %v1404_v9 = vmul.f32 %v2291_v7, %v1402_v3 }
0x205b   :  { %1406 = vrot.lane.b32.xlu1 %v1404_v9, %s2437_s2 }
0x20cd   :  { %v1407_v43 = vpop.permute.xlu1 %1406 }
0x20ce   :  { %v1409_v13 = vadd.f32 %v1407_v43, %v1399_v12 }
0x20d0   :  { %2292 = vtanh.f32 %v1409_v13 }
0x20da   :  { %v2293_v14 = vpop.eup %2292 }
0x20db   :  { %1412 = vrot.lane.b32.xlu0 %v2293_v14, %s2437_s2 }
0x20df   :  { %1319 = vrot.lane.b32.xlu0 %v1318_v16, %s2440_s30 }
0x214d   :  { %v1413_v17 = vpop.permute.xlu0 %1412 }
0x214e   :  { %v2804_v19 = vmul.f32 %v2291_v7, %v1413_v17 }
0x2150   :  { %v1421_v20 = vpack.c.bf16 %v2804_v19, %v2804_v19 }
0x2151   :  { %v1320_v21 = vpop.permute.xlu0 %1319 }
0x2152   :  { %v1429_v22 = vrot.slane %v1421_v20, %v2556_v35  ;;  %1322 = vst.msk [vmem:[#allocation3] sm:$0x3] %vm66_vm3, %v1320_v21 }
0x2154   :  { %v1436_v23 = vrot.slane %v1429_v22, %v2556_v35 }
0x2156   :  { %1437 = vrot.lane.b32.xlu1 %v1436_v23, %s2440_s30 }
0x2159   :  { %v1944_v26 = vld.sshfl [vmem:[#allocation3] sm:$0x3 pattern:$0x76325410] }
0x215a   :  { %1511 = vrot.lane.b32.xlu0 %v1944_v26, %s2437_s2 }
0x21c8   :  { %v1438_v27 = vpop.permute.xlu1 %1437 }
0x21c9   :  { %1440 = vst.msk [vmem:[#allocation2] sm:$0x1] %vm340_vm6, %v1438_v27 }
0x21cc   :  { %v1512_v47 = vpop.permute.xlu0 %1511 }
0x21d0   :  { %v1450_v28 = vld [vmem:[#allocation2] sm:$0x1] }
0x21d1   :  { %2141 = vmatmul.mubr.msk.bf16.vlgmr.msra.gmra.mrb[24].mxu1 %vm103_vm2, %v1450_v28 }
0x21d2   :  { %2145 = vmatpush3.bf16.msra.mxu1 %v2815_v29  ;;  %2152 = vmatprep.mubr.msk.bf16.mxu1 %vm2435_vm1, %v2434_v0 }
0x21d3   :  { %2146 = vmatprep.subr.bf16.mxu1 %v2434_v0 }
0x21d6   :  { %2147 = vmatpush3.bf16.msra.mxu1 %v2821_v24 }
0x21d7   :  { %2148 = vmatprep.subr.bf16.mxu1 %v2434_v0 }
0x21da   :  { %2149 = vmatpush3.bf16.msra.mxu1 %v2825_v31 }
0x21db   :  { %2150 = vmatprep.subr.bf16.mxu1 %v2434_v0 }
0x21de   :  { %2151 = vmatpush3.bf16.msra.mxu1 %v2829_v32 }
0x22a4   :  { %v1488_v37 = vpop.f32.mrb[24].mxu1 }
0x22a5   :  { %v1494_v25 = vadd.f32 %v1488_v37, %v1449_v36  ;;  %v2142_v30 = vpop.f32.mrb[25].mxu1 }
0x22a6   :  { %v1491_v38 = vpop.f32.mrb[26].mxu1 }
0x22a7   :  { %2294 = vtanh.f32 %v1494_v25  ;;  %v2143_v39 = vpop.f32.mrb[27].mxu1  ;;  %v1943_v40 = vmul.f32 -1.442695, %v1494_v25  ;;  %v1668_v38 = vld [vmem:[#allocation5 + $0x7] sm:$0x1] }
0x22a8   :  { %v1669_v39 = vunpack.c.l.bf16 %v1668_v38 }
0x22a9   :  { %2296 = vpow2.f32 %v1943_v40 }
0x22b1   :  { %v2295_v33 = vpop.eup %2294 }
0x22b2   :  { %1516 = vrot.lane.b32.xlu1 %v2295_v33, %s2437_s2 }
0x22b3   :  { %v2297_v41 = vpop.eup %2296 }
0x22b4   :  { %v1499_v42 = vadd.f32 1.0, %v2297_v41 }
0x22b6   :  { %2298 = vrcp.f32 %v1499_v42 }
0x22c0   :  { %v2299_v44 = vpop.eup %2298 }
0x22c1   :  { %v1514_v48 = vmul.f32 %v2299_v44, %v1512_v47 }
0x2324   :  { %v1517_v45 = vpop.permute.xlu1 %1516 }
0x2325   :  { %v1519_v46 = vmul.f32 %v2299_v44, %v1517_v45 }
0x2327   :  { %1521 = vrot.lane.b32.xlu1 %v1519_v46, %s2437_s2 }
0x2399   :  { %v1522_v49 = vpop.permute.xlu1 %1521 }
0x239a   :  { %v1524_v50 = vadd.f32 %v1522_v49, %v1514_v48 }
0x239c   :  { %2300 = vtanh.f32 %v1524_v50  ;;  %v1538_v22 = vrot.slane %v1524_v50, %v2580_v63 }
0x23a6   :  { %v2301_v51 = vpop.eup %2300 }
0x23a7   :  { %1527 = vrot.lane.b32.xlu0 %v2301_v51, %s2437_s2 }
0x23ab   :  { %1417 = vrot.lane.b32.xlu0 %v1409_v13, %s2440_s30 }
0x2419   :  { %v1528_v52 = vpop.permute.xlu0 %1527 }
0x241a   :  { %v1530_v53 = vmul.f32 %v2299_v44, %v1528_v52 }
0x241c   :  { %v1543_v54 = vpack.c.bf16 %v1530_v53, %v1530_v53 }
0x241d   :  { %v1418_v55 = vpop.permute.xlu0 %1417 }
0x241e   :  { %v1551_v56 = vrot.slane %v1543_v54, %v2556_v35  ;;  %1420 = vst.msk [vmem:[#allocation4] sm:$0x3] %vm66_vm3, %v1418_v55 }
0x2420   :  { %v1558_v57 = vrot.slane %v1551_v56, %v2556_v35 }
0x2422   :  { %1559 = vrot.lane.b32.xlu1 %v1558_v57, %s2428_s25 }
0x2425   :  { %v1607_v58 = vld [vmem:[#allocation4] sm:$0x3] }
0x2426   :  { %1616 = vrot.lane.b32.xlu0 %v1607_v58, %s2437_s2 }
0x2494   :  { %v1560_v59 = vpop.permute.xlu1 %1559 }
0x2495   :  { %1562 = vst.msk [vmem:[#allocation2] sm:$0x1] %vm216_vm4, %v1560_v59 }
0x2498   :  { %v1617_v14 = vpop.permute.xlu0 %1616 }
0x249c   :  { %v1563_v60 = vld [vmem:[#allocation2] sm:$0x1] }
0x249d   :  { %2153 = vmatmul.mubr.msk.bf16.vlgmr.msra.gmra.mrb[28].mxu1 %vm243_vm5, %v1563_v60 }
0x2570   :  { %v1601_v61 = vpop.f32.mrb[28].mxu1 }
0x2571   :  { %v1602_v2 = vadd.f32 %v2846_v62, %v1601_v61  ;;  %v2154_v1 = vpop.f32.mrb[29].mxu1 }
0x2572   :  { %v1604_v4 = vpop.f32.mrb[30].mxu1 }
0x2573   :  { %2302 = vtanh.f32 %v1602_v2  ;;  %v2155_v5 = vpop.f32.mrb[31].mxu1  ;;  %v1946_v3 = vmul.f32 -1.442695, %v1602_v2 }
0x2575   :  { %2304 = vpow2.f32 %v1946_v3 }
0x257d   :  { %v2303_v7 = vpop.eup %2302 }
0x257e   :  { %1621 = vrot.lane.b32.xlu1 %v2303_v7, %s2437_s2 }
0x257f   :  { %v2305_v9 = vpop.eup %2304 }
0x2580   :  { %v1611_v10 = vadd.f32 1.0, %v2305_v9 }
0x2582   :  { %2306 = vrcp.f32 %v1611_v10 }
0x258c   :  { %v2307_v12 = vpop.eup %2306 }
0x258d   :  { %v1619_v16 = vmul.f32 %v2307_v12, %v1617_v14 }
0x25f0   :  { %v1622_v43 = vpop.permute.xlu1 %1621 }
0x25f1   :  { %v1624_v13 = vmul.f32 %v2307_v12, %v1622_v43 }
0x25f3   :  { %1626 = vrot.lane.b32.xlu1 %v1624_v13, %s2437_s2 }
0x2665   :  { %v1627_v17 = vpop.permute.xlu1 %1626 }
0x2666   :  { %v1629_v20 = vadd.f32 %v1627_v17, %v1619_v16 }
0x2668   :  { %2308 = vtanh.f32 %v1629_v20 }
0x2672   :  { %v2309_v21 = vpop.eup %2308 }
0x2673   :  { %1632 = vrot.lane.b32.xlu0 %v2309_v21, %s2437_s2 }
0x2677   :  { %1539 = vrot.lane.b32.xlu0 %v1538_v22, %s2440_s30 }
0x26e5   :  { %v1633_v23 = vpop.permute.xlu0 %1632 }
0x26e6   :  { %v2854_v26 = vmul.f32 %v2307_v12, %v1633_v23 }
0x26e8   :  { %v1641_v27 = vpack.c.bf16 %v2854_v26, %v2854_v26 }
0x26e9   :  { %v1540_v28 = vpop.permute.xlu0 %1539 }
0x26ea   :  { %v1649_v34 = vrot.slane %v1641_v27, %v2556_v35  ;;  %1542 = vst.msk [vmem:[#allocation3] sm:$0x3] %vm66_vm3, %v1540_v28 }
0x26ec   :  { %v1656_v36 = vrot.slane %v1649_v34, %v2556_v35 }
0x26ee   :  { %1657 = vrot.lane.b32.xlu1 %v1656_v36, %s2440_s30 }
0x26f1   :  { %v1949_v37 = vld.sshfl [vmem:[#allocation3] sm:$0x3 pattern:$0x76325410] }
0x26f2   :  { %1731 = vrot.lane.b32.xlu0 %v1949_v37, %s2437_s2 }
0x2760   :  { %v1658_v25 = vpop.permute.xlu1 %1657 }
0x2761   :  { %1660 = vst.msk [vmem:[#allocation2] sm:$0x1] %vm340_vm6, %v1658_v25 }
0x2768   :  { %v1670_v30 = vld [vmem:[#allocation2] sm:$0x1] }
0x2769   :  { %2161 = vmatmul.mubr.msk.bf16.vlgmr.msra.gmra.mrb[24].mxu0 %vm103_vm2, %v1670_v30 }
0x276a   :  { %2165 = vmatpush3.bf16.msra.mxu0 %v2815_v29  ;;  %2172 = vmatprep.mubr.msk.bf16.mxu0 %vm2435_vm1, %v2434_v0 }
0x276b   :  { %2166 = vmatprep.subr.bf16.mxu0 %v2434_v0 }
0x276e   :  { %2167 = vmatpush3.bf16.msra.mxu0 %v2821_v24 }
0x276f   :  { %2168 = vmatprep.subr.bf16.mxu0 %v2434_v0 }
0x2772   :  { %2169 = vmatpush3.bf16.msra.mxu0 %v2825_v31 }
0x2773   :  { %2170 = vmatprep.subr.bf16.mxu0 %v2434_v0 }
0x2776   :  { %2171 = vmatpush3.bf16.msra.mxu0 %v2829_v32  ;;  %v1732_v32 = vpop.permute.xlu0 %1731 }
0x283c   :  { %v1708_v33 = vpop.f32.mrb[24].mxu0 }
0x283d   :  { %v1714_v40 = vadd.f32 %v1708_v33, %v1669_v39  ;;  %v2162_v29 = vpop.f32.mrb[25].mxu0 }
0x283e   :  { %v1711_v41 = vpop.f32.mrb[26].mxu0 }
0x283f   :  { %2310 = vtanh.f32 %v1714_v40  ;;  %v2163_v42 = vpop.f32.mrb[27].mxu0  ;;  %v1948_v24 = vmul.f32 -1.442695, %v1714_v40 }
0x2841   :  { %2312 = vpow2.f32 %v1948_v24 }
0x2849   :  { %v2311_v44 = vpop.eup %2310 }
0x284a   :  { %1736 = vrot.lane.b32.xlu1 %v2311_v44, %s2437_s2 }
0x284b   :  { %v2313_v45 = vpop.eup %2312 }
0x284c   :  { %v1719_v46 = vadd.f32 1.0, %v2313_v45 }
0x284e   :  { %2314 = vrcp.f32 %v1719_v46 }
0x2858   :  { %v2315_v31 = vpop.eup %2314 }
0x2859   :  { %v1734_v48 = vmul.f32 %v2315_v31, %v1732_v32 }
0x28bc   :  { %v1737_v0 = vpop.permute.xlu1 %1736 }
0x28bd   :  { %v1739_v47 = vmul.f32 %v2315_v31, %v1737_v0 }
0x28bf   :  { %1741 = vrot.lane.b32.xlu1 %v1739_v47, %s2437_s2 }
0x2931   :  { %v1742_v49 = vpop.permute.xlu1 %1741 }
0x2932   :  { %v1744_v50 = vadd.f32 %v1742_v49, %v1734_v48 }
0x2934   :  { %2316 = vtanh.f32 %v1744_v50 }
0x293e   :  { %v2317_v51 = vpop.eup %2316 }
0x293f   :  { %1747 = vrot.lane.b32.xlu0 %v2317_v51, %s2437_s2 }
0x2943   :  { %1637 = vrot.lane.b32.xlu0 %v1629_v20, %s2440_s30 }
0x29b1   :  { %v1748_v52 = vpop.permute.xlu0 %1747 }
0x29b2   :  { %v1750_v53 = vmul.f32 %v2315_v31, %v1748_v52 }
0x29b4   :  { %v1763_v54 = vpack.c.bf16 %v1750_v53, %v1750_v53 }
0x29b5   :  { %v1638_v55 = vpop.permute.xlu0 %1637 }
0x29b6   :  { %v1771_v56 = vrot.slane %v1763_v54, %v2556_v35  ;;  %1640 = vst.msk [vmem:[#allocation4] sm:$0x3] %vm66_vm3, %v1638_v55 }
0x29b8   :  { %v1778_v57 = vrot.slane %v1771_v56, %v2556_v35 }
0x29ba   :  { %1779 = vrot.lane.b32.xlu1 %v1778_v57, %s2428_s25 }
0x29bd   :  { %v1827_v58 = vld [vmem:[#allocation4] sm:$0x3] }
0x29be   :  { %1836 = vrot.lane.b32.xlu0 %v1827_v58, %s2437_s2 }
0x2a2c   :  { %v1780_v59 = vpop.permute.xlu1 %1779 }
0x2a2d   :  { %1782 = vst.msk [vmem:[#allocation2] sm:$0x1] %vm216_vm4, %v1780_v59 }
0x2a30   :  { %v1837_v14 = vpop.permute.xlu0 %1836 }
0x2a34   :  { %v1783_v60 = vld [vmem:[#allocation2] sm:$0x1] }
0x2a35   :  { %2173 = vmatmul.mubr.msk.bf16.vlgmr.msra.gmra.mrb[28].mxu0 %vm243_vm5, %v1783_v60 }
0x2b08   :  { %v1821_v61 = vpop.f32.mrb[28].mxu0 }
0x2b09   :  { %v1822_v2 = vadd.f32 %v2846_v62, %v1821_v61  ;;  %v2174_v1 = vpop.f32.mrb[29].mxu0  ;;  %v1758_v62 = vrot.slane %v1744_v50, %v2580_v63 }
0x2b0a   :  { %v1824_v4 = vpop.f32.mrb[30].mxu0 }
0x2b0b   :  { %2318 = vtanh.f32 %v1822_v2  ;;  %v2175_v5 = vpop.f32.mrb[31].mxu0  ;;  %v1951_v3 = vmul.f32 -1.442695, %v1822_v2 }
0x2b0d   :  { %2320 = vpow2.f32 %v1951_v3 }
0x2b15   :  { %v2319_v7 = vpop.eup %2318 }
0x2b16   :  { %1841 = vrot.lane.b32.xlu1 %v2319_v7, %s2437_s2 }
0x2b17   :  { %v2321_v9 = vpop.eup %2320 }
0x2b18   :  { %v1831_v10 = vadd.f32 1.0, %v2321_v9 }
0x2b1a   :  { %2322 = vrcp.f32 %v1831_v10 }
0x2b24   :  { %v2323_v12 = vpop.eup %2322 }
0x2b25   :  { %v1839_v16 = vmul.f32 %v2323_v12, %v1837_v14 }
0x2b88   :  { %v1842_v43 = vpop.permute.xlu1 %1841 }
0x2b89   :  { %v1844_v13 = vmul.f32 %v2323_v12, %v1842_v43 }
0x2b8b   :  { %1846 = vrot.lane.b32.xlu1 %v1844_v13, %s2437_s2 }
0x2b8f   :  { %343 = vrot.lane.b32.xlu1 %v2586_v6, %s2428_s25 }
0x2b93   :  { %782 = vrot.lane.b32.xlu1 %v2674_v11, %s2428_s25 }
0x2b97   :  { %1222 = vrot.lane.b32.xlu1 %v2762_v18, %s2428_s25 }
0x2b9b   :  { %1662 = vrot.lane.b32.xlu1 %v2854_v26, %s2428_s25 }
0x2b9f   :  { %1759 = vrot.lane.b32.xlu1 %v1758_v62, %s2440_s30 }
0x2bfd   :  { %v1847_v17 = vpop.permute.xlu1 %1846 }
0x2bfe   :  { %v1849_v20 = vadd.f32 %v1847_v17, %v1839_v16 }
0x2c00   :  { %2324 = vtanh.f32 %v1849_v20 }
0x2c01   :  { %v344_v21 = vpop.permute.xlu1 %343 }
0x2c02   :  { %346 = vst.msk [vmem:[#allocation11] sm:$0x3] %vm66_vm3, %v344_v21 }
0x2c05   :  { %v783_v6 = vpop.permute.xlu1 %782 }
0x2c06   :  { %786 = vst.msk [vmem:[#allocation11 + $0x4] sm:$0x3] %vm66_vm3, %v783_v6 }
0x2c09   :  { %v1223_v11 = vpop.permute.xlu1 %1222 }
0x2c0a   :  { %v2325_v18 = vpop.eup %2324  ;;  %1226 = vst.msk [vmem:[#allocation11 + $0x8] sm:$0x3] %vm66_vm3, %v1223_v11 }
0x2c0b   :  { %1852 = vrot.lane.b32.xlu0 %v2325_v18, %s2437_s2 }
0x2c0d   :  { %v1663_v63 = vpop.permute.xlu1 %1662 }
0x2c0e   :  { %1666 = vst.msk [vmem:[#allocation11 + $0xc] sm:$0x3] %vm66_vm3, %v1663_v63 }
0x2c0f   :  { %562 = vrot.lane.b32.xlu0 %v2630_v8, %s2428_s25 }
0x2c11   :  { %v1760_v22 = vpop.permute.xlu1 %1759 }
0x2c12   :  { %1762 = vst.msk [vmem:[#allocation3] sm:$0x3] %vm66_vm3, %v1760_v22 }
0x2c13   :  { %1002 = vrot.lane.b32.xlu0 %v2718_v15, %s2428_s25 }
0x2c17   :  { %1442 = vrot.lane.b32.xlu0 %v2804_v19, %s2428_s25 }
0x2c7d   :  { %v1853_v23 = vpop.permute.xlu0 %1852 }
0x2c7e   :  { %v1855_v26 = vmul.f32 %v2323_v12, %v1853_v23 }
0x2c80   :  { %v1861_v27 = vpack.c.bf16 %v1855_v26, %v1855_v26  ;;  %1882 = vrot.lane.b32.xlu0 %v1855_v26, %s2428_s25  ;;  %s2399_s25 = scalar_lea.vmem %s1893_s7, 256 }
0x2c81   :  { %v563_v28 = vpop.permute.xlu0 %562  ;;  %p2400_p10 = scmp.ne.s32.totalorder %s1893_s7, %s2399_s25  ;;  %p2405_p12 = scmp.lt.s32.totalorder %s2399_s25, %s2399_s25 }
0x2c82   :  { %v1869_v34 = vrot.slane %v1861_v27, %v2556_v35  ;;  %566 = vst.msk [vmem:[#allocation11 + $0x2] sm:$0x3] %vm66_vm3, %v563_v28 }
0x2c83   :  { %p2406_p13 = por %p2405_p12, %p2404_p11 }
0x2c84   :  { %v1876_v8 = vrot.slane %v1869_v34, %v2556_v35  ;;  %1857 = vrot.lane.b32.xlu0 %v1849_v20, %s2440_s30 }
0x2c85   :  { %v1003_v36 = vpop.permute.xlu0 %1002  ;;  %p2407_p0 = pnand %p2406_p13, %p2400_p10 }
0x2c86   :  { %1006 = vst.msk [vmem:[#allocation11 + $0x6] sm:$0x3] %vm66_vm3, %v1003_v36  ;;  %1877 = vrot.lane.b32.xlu1 %v1876_v8, %s2440_s30 }
0x2c89   :  { %v1443_v15 = vpop.permute.xlu0 %1442 }
0x2c8a   :  { %1446 = vst.msk [vmem:[#allocation11 + $0xa] sm:$0x3] %vm66_vm3, %v1443_v15 }
0x2cf2   :  { %v1883_v19 = vpop.permute.xlu0 %1882 }
0x2cf3   :  { %1886 = vst.msk [vmem:[#allocation11 + $0xe] sm:$0x3] %vm66_vm3, %v1883_v19 }
0x2cf4   :  { %2410 = shalt.err (!%p2407_p0)
}
0x2cf5   :  { %s2411_s10 = scalar_lea.hbm %s2939_s4, 256 }
0x2cf6   :  { %p2412_p1 = scmp.ne.s32.totalorder %s2939_s4, %s2411_s10  ;;  %p2415_p2 = scmp.lt.u32.totalorder %s2411_s10, %s2939_s4 }
0x2cf8   :  { %p2417_p3 = pnand %p2415_p2, %p2412_p1 }
0x2cfa   :  { %2420 = shalt.err (!%p2417_p3)
}
0x2cfb   :  { %s2442_s14 = smov 2   ;;  %v1858_v35 = vpop.permute.xlu0 %1857  ;;  %v1878_v37 = vpop.permute.xlu1 %1877 }
0x2cfc   :  { %1898 = dma.vmem_to_hbm [thread:$0]  %s1893_s7, 256, %s2939_s4, [#allocation7], %s2437_s2, %s2437_s2, %s2442_s14   ;;  %1860 = vst.msk [vmem:[#allocation4] sm:$0x3] %vm66_vm3, %v1858_v35 }
0x2cfd   :  { %1880 = vst.msk [vmem:[#allocation2] sm:$0x1] %vm340_vm6, %v1878_v37 }
0x2cfe   :  { %2425 = dma.done.wait [#allocation7], 256  }
0x2cff   :  { %2426 = vsyncadd [#allocation7], 4294967040 }
0x2d00   :  { %1902 = vsyncpa [#allocation6], 1 }
0x2d01   :  { %1903 = vsyncpa [#allocation9], 1 }
0x2d02   :  { %1904 = vsyncpa [#allocation7], 1 }

</bundles_post_ra>
